<compile_context>
chip_gen: v5e
topology: v5e:2x2
jax: 0.10.0
libtpu: 0.0.40
codegen_flags: <defaults>
</compile_context>

<pallas_src>
import jax
import jax.numpy as jnp
from jax.experimental import pallas as pl
from jax.experimental.pallas import tpu as pltpu

LEAKY_SLOPE = 0.01   # nn.LeakyReLU default negative_slope
BN_EPS = 1e-5        # nn.BatchNorm2d default eps
LANE = 128


def _round_up(x, m):
    return (x + m - 1) // m * m


def _double_conv_kernel(x_ref, w1_ref, w2_ref, bn_ref, o_ref, apad_ref):
    """Fused double conv for one (image, row-tile) grid step.

    x_ref:    (1, TH+4, W+2, Cin) bf16  zero-padded input rows for this tile
                                        (2-row / 1-col halo, built wrapper-side)
    w1_ref:   (9*Cin, Cp)         bf16  stage-1 im2col weights
    w2_ref:   (9, Cp, Cp)         bf16  stage-2 per-tap weights
    bn_ref:   (4, Cp)             f32   rows = [scale1, shift1, scale2, shift2]
    o_ref:    (1, TH*W, Cp)       f32   lane-dense output block (full Cp lanes)
    apad_ref: (TH+2, W+2, Cp)     bf16  scratch: padded stage-1 activation tile
    """
    TH = x_ref.shape[1] - 4
    W = x_ref.shape[2] - 2
    Cin = x_ref.shape[3]
    Cp = w1_ref.shape[1]

    j = pl.program_id(1)
    last_j = pl.num_programs(1) - 1

    # One-time (per image) zeroing of the W-halo columns of the scratch; the
    # interior is fully overwritten every step so the border stays zero.
    @pl.when(j == 0)
    def _():
        apad_ref[:, pl.ds(0, 1), :] = jnp.zeros((TH + 2, 1, Cp), apad_ref.dtype)
        apad_ref[:, pl.ds(W + 1, 1), :] = jnp.zeros((TH + 2, 1, Cp),
                                                    apad_ref.dtype)

    # ---- stage 1: conv3x3 (one im2col matmul, K = 9*Cin) + BN + LeakyReLU ---
    # Computed for TH+2 rows (1-row halo recomputed on each side) so stage 2
    # never needs activation rows from a neighbouring tile.
    xt = x_ref[0]                                        # (TH+4, W+2, Cin)
    cols = []
    for dy in range(3):
        for dx in range(3):
            cols.append(
                xt[dy:dy + TH + 2, dx:dx + W, :].reshape((TH + 2) * W, Cin))
    p1 = jnp.concatenate(cols, axis=-1)                  # ((TH+2)*W, 9*Cin)
    a1 = jnp.dot(p1, w1_ref[...], preferred_element_type=jnp.float32)
    a1 = a1 * bn_ref[0, :] + bn_ref[1, :]
    a1 = jnp.where(a1 > 0, a1, LEAKY_SLOPE * a1)
    # nn.Dropout(0.2) is identity in eval mode.

    apad_ref[:, pl.ds(1, W), :] = (
        a1.reshape(TH + 2, W, Cp).astype(apad_ref.dtype))

    # Out-of-image halo rows are conv2's zero padding on boundary tiles.
    @pl.when(j == 0)
    def _():
        apad_ref[pl.ds(0, 1), pl.ds(1, W), :] = jnp.zeros((1, W, Cp),
                                                          apad_ref.dtype)

    @pl.when(j == last_j)
    def _():
        apad_ref[pl.ds(TH + 1, 1), pl.ds(1, W), :] = jnp.zeros((1, W, Cp),
                                                               apad_ref.dtype)

    # ---- stage 2: conv3x3 as 9 accumulating K=Cp matmuls (no materialized
    # im2col buffer) + BN + LeakyReLU ----------------------------------------
    acc = None
    for dy in range(3):
        for dx in range(3):
            win = apad_ref[pl.ds(dy, TH), pl.ds(dx, W), :].reshape(TH * W, Cp)
            part = jnp.dot(win, w2_ref[dy * 3 + dx],
                           preferred_element_type=jnp.float32)
            acc = part if acc is None else acc + part
    y = acc * bn_ref[2, :] + bn_ref[3, :]
    y = jnp.where(y > 0, y, LEAKY_SLOPE * y)

    # Full-Cp lane-dense store; the wrapper slices back to Cout.
    o_ref[0] = y.astype(o_ref.dtype)


def _fold_bn(bias, gamma, beta, mean, var):
    scale = gamma / jnp.sqrt(var + BN_EPS)
    shift = beta + (bias - mean) * scale
    return scale, shift


def _pick_tile_h(H):
    # Largest divisor of H that is <= 32: keeps the per-step working set small
    # enough for v7x's 64 MiB VMEM at realistic W; raise on v6e/v5e if desired.
    th = 1
    for t in range(1, min(H, 32) + 1):
        if H % t == 0:
            th = t
    return th


def double_conv_forward(x_nchw, p, tile_h=None):
    """PyTorch inconv/double_conv forward (eval-mode), NCHW in / NCHW out."""
    N, Cin, H, W = x_nchw.shape
    Cout = p["w1"].shape[-1]
    Cp = _round_up(Cout, LANE)

    TH = _pick_tile_h(H) if tile_h is None else tile_h
    assert H % TH == 0, (H, TH)
    assert (TH * W) % 8 == 0, (TH, W)
    HT = H // TH

    # NCHW -> NHWC at the module boundary, plus the conv halo (2 rows so the
    # 1-row stage-1 halo can be recomputed per tile, 1 col).  XLA fuses the
    # transpose/pad/cast into a single pass over the tiny Cin-channel input.
    x = jnp.transpose(x_nchw, (0, 2, 3, 1)).astype(jnp.bfloat16)
    xpp = jnp.pad(x, ((0, 0), (2, 2), (1, 1), (0, 0)))       # (N, H+4, W+2, Cin)
    # Overlapping (TH+4)-row windows, duplicated wrapper-side so the kernel's
    # input BlockSpec stays a plain blocked spec (no overlap at DMA time).
    x_tiles = jnp.stack(
        [xpp[:, jj * TH: jj * TH + TH + 4] for jj in range(HT)], axis=1)
    x_tiles = x_tiles.reshape(N * HT, TH + 4, W + 2, Cin)

    # im2col / per-tap weights, channel-padded to a lane-dense Cp.
    w1 = jnp.pad(p["w1"], ((0, 0), (0, 0), (0, 0), (0, Cp - Cout)))
    w1 = w1.reshape(9 * Cin, Cp).astype(jnp.bfloat16)
    w2 = jnp.pad(p["w2"], ((0, 0), (0, 0), (0, Cp - Cout), (0, Cp - Cout)))
    w2 = w2.reshape(9, Cp, Cp).astype(jnp.bfloat16)

    # Folded BN (+conv bias) constants, merged into one (4, Cp) array.
    s1, t1 = _fold_bn(p["b1"], p["g1"], p["be1"], p["rm1"], p["rv1"])
    s2, t2 = _fold_bn(p["b2"], p["g2"], p["be2"], p["rm2"], p["rv2"])
    padv = lambda v: jnp.pad(v, (0, Cp - Cout))
    bn = jnp.stack([padv(s1), padv(t1), padv(s2), padv(t2)]).astype(jnp.float32)

    out = pl.pallas_call(
        _double_conv_kernel,
        out_shape=jax.ShapeDtypeStruct((N, H * W, Cp), jnp.float32),
        grid_spec=pltpu.PrefetchScalarGridSpec(
            num_scalar_prefetch=0,
            grid=(N, HT),
            in_specs=[
                pl.BlockSpec((1, TH + 4, W + 2, Cin),
                             lambda n, j: (n * HT + j, 0, 0, 0)),
                # Constant index maps: weights / BN constants stay VMEM-resident.
                pl.BlockSpec((9 * Cin, Cp), lambda n, j: (0, 0)),
                pl.BlockSpec((9, Cp, Cp), lambda n, j: (0, 0, 0)),
                pl.BlockSpec((4, Cp), lambda n, j: (0, 0)),
            ],
            out_specs=pl.BlockSpec((1, TH * W, Cp), lambda n, j: (n, j, 0)),
            scratch_shapes=[
                pltpu.VMEM((TH + 2, W + 2, Cp), jnp.bfloat16),
            ],
        ),
        compiler_params=pltpu.CompilerParams(
            dimension_semantics=("parallel", "arbitrary"),
            # <= physical VMEM on v5e/v6e (128 MiB) and v7x (64 MiB); TH is the
            # knob if a larger W needs a smaller per-step working set.
            vmem_limit_bytes=64 * 1024 * 1024,
        ),
    )(x_tiles, w1, w2, bn)

    # Lane-dense (N, H*W, Cp) -> drop channel padding -> NCHW; XLA fuses the
    # slice / reshape / transpose into a single output pass.
    out = out.reshape(N, H, W, Cp)[:, :, :, :Cout]
    return jnp.transpose(out, (0, 3, 1, 2))


def init_double_conv_params(key, in_ch, out_ch):
    """Deterministic synthetic parameters matching nn.Conv2d/BatchNorm2d shapes."""
    ks = jax.random.split(key, 8)

    def conv_params(kw, kb, cin, cout):
        fan_in = cin * 3 * 3
        bound = 1.0 / jnp.sqrt(fan_in)
        w = jax.random.uniform(kw, (3, 3, cin, cout), jnp.float32, -bound, bound)
        b = jax.random.uniform(kb, (cout,), jnp.float32, -bound, bound)
        return w, b

    w1, b1 = conv_params(ks[0], ks[1], in_ch, out_ch)
    w2, b2 = conv_params(ks[2], ks[3], out_ch, out_ch)
    g1 = 1.0 + 0.1 * jax.random.normal(ks[4], (out_ch,), jnp.float32)
    be1 = 0.1 * jax.random.normal(ks[5], (out_ch,), jnp.float32)
    g2 = 1.0 + 0.1 * jax.random.normal(ks[6], (out_ch,), jnp.float32)
    be2 = 0.1 * jax.random.normal(ks[7], (out_ch,), jnp.float32)
    rm1 = jnp.zeros((out_ch,), jnp.float32); rv1 = jnp.ones((out_ch,), jnp.float32)
    rm2 = jnp.zeros((out_ch,), jnp.float32); rv2 = jnp.ones((out_ch,), jnp.float32)
    return dict(w1=w1, b1=b1, g1=g1, be1=be1, rm1=rm1, rv1=rv1,
                w2=w2, b2=b2, g2=g2, be2=be2, rm2=rm2, rv2=rv2)


def _reference(x_nchw, p):
    """Plain-JAX reference (NCHW) using the same bf16 conv operands + f32 acc."""
    def block(x, w, b, g, be, rm, rv):
        w_oihw = jnp.transpose(w, (3, 2, 0, 1)).astype(jnp.bfloat16)
        y = jax.lax.conv_general_dilated(
            x.astype(jnp.bfloat16), w_oihw, window_strides=(1, 1),
            padding=((1, 1), (1, 1)),
            dimension_numbers=("NCHW", "OIHW", "NCHW"),
            preferred_element_type=jnp.float32)
        y = y + b[None, :, None, None]
        y = g[None, :, None, None] * (y - rm[None, :, None, None]) / \
            jnp.sqrt(rv[None, :, None, None] + BN_EPS) + be[None, :, None, None]
        return jnp.where(y > 0, y, LEAKY_SLOPE * y)

    y = block(x_nchw, p["w1"], p["b1"], p["g1"], p["be1"], p["rm1"], p["rv1"])
    y = block(y, p["w2"], p["b2"], p["g2"], p["be2"], p["rm2"], p["rv2"])
    return y


if __name__ == "__main__":
    key = jax.random.PRNGKey(0)
    k_x, k_p = jax.random.split(key)
    N, in_ch, out_ch, H, W = 2, 4, 8, 16, 16
    x = jax.random.normal(k_x, (N, in_ch, H, W), jnp.float32)
    params = init_double_conv_params(k_p, in_ch, out_ch)

    # tile_h=4 -> grid (N, 4): exercises the top-, interior- and bottom-tile
    # halo paths of the H-tiled kernel.
    fwd = jax.jit(lambda xx, pp: double_conv_forward(xx, pp, tile_h=4))
    out = jax.block_until_ready(fwd(x, params))
    assert out.shape == (N, out_ch, H, W), out.shape

    ref = jax.block_until_ready(_reference(x, params))
    max_err = float(jnp.max(jnp.abs(out - ref)))
    assert jnp.allclose(out, ref, rtol=5e-3, atol=5e-3), max_err

    print("KERNEL_OK")
</pallas_src>

<mosaic_0001>
module attributes {stable_mosaic.version = 11 : i64} {
  func.func @_double_conv_kernel(%arg0: i32, %arg1: i32, %arg2: memref<1x8x18x4xbf16, #tpu.memory_space<vmem>>, %arg3: memref<36x128xbf16, #tpu.memory_space<vmem>>, %arg4: memref<9x128x128xbf16, #tpu.memory_space<vmem>>, %arg5: memref<4x128xf32, #tpu.memory_space<vmem>>, %arg6: memref<1x64x128xf32, #tpu.memory_space<vmem>>, %arg7: memref<6x18x128xbf16, #tpu.memory_space<vmem>>) attributes {dimension_semantics = [#tpu.dimension_semantics<parallel>, #tpu.dimension_semantics<arbitrary>], iteration_bounds = array<i64: 2, 4>, scalar_prefetch = 0 : i64, scratch_operands = 1 : i64, tpu.core_type = #tpu.core_type<tc>, window_params = [{transform_indices = @transform_0, window_bounds = array<i64: 1, 8, 18, 4>}, {pipeline_mode = #tpu.pipeline_mode<synchronous>, transform_indices = @transform_1, window_bounds = array<i64: 36, 128>}, {pipeline_mode = #tpu.pipeline_mode<synchronous>, transform_indices = @transform_2, window_bounds = array<i64: 9, 128, 128>}, {pipeline_mode = #tpu.pipeline_mode<synchronous>, transform_indices = @transform_3, window_bounds = array<i64: 4, 128>}, {transform_indices = @transform_4, window_bounds = array<i64: 1, 64, 128>}]} {
    %c0_i32 = arith.constant 0 : i32
    %0 = arith.cmpi eq, %arg1, %c0_i32 : i32
    %1 = arith.extui %0 : i1 to i32
    %c0_i32_0 = arith.constant 0 : i32
    %2 = arith.cmpi ne, %1, %c0_i32_0 : i32
    scf.if %2 {
      %cst_82 = arith.constant 0.000000e+00 : bf16
      %121 = vector.broadcast %cst_82 : bf16 to vector<6x1x128xbf16>
      %c0_83 = arith.constant 0 : index
      %c0_84 = arith.constant 0 : index
      %c0_85 = arith.constant 0 : index
      %122 = vector.load %arg7[%c0_83, %c0_84, %c0_85] : memref<6x18x128xbf16, #tpu.memory_space<vmem>>, vector<6x1x128xbf16>
      tpu.vector_store %arg7[%c0_83, %c0_84, %c0_85], %121 {strides = array<i32>} : memref<6x18x128xbf16, #tpu.memory_space<vmem>>, vector<6x1x128xbf16>,
      %cst_86 = arith.constant 0.000000e+00 : bf16
      %123 = vector.broadcast %cst_86 : bf16 to vector<6x1x128xbf16>
      %c0_87 = arith.constant 0 : index
      %c17 = arith.constant 17 : index
      %c0_88 = arith.constant 0 : index
      %124 = vector.load %arg7[%c0_87, %c17, %c0_88] : memref<6x18x128xbf16, #tpu.memory_space<vmem>>, vector<6x1x128xbf16>
      tpu.vector_store %arg7[%c0_87, %c17, %c0_88], %123 {strides = array<i32>} : memref<6x18x128xbf16, #tpu.memory_space<vmem>>, vector<6x1x128xbf16>,
    } else {
    }
    %c0 = arith.constant 0 : index
    %c0_1 = arith.constant 0 : index
    %c0_2 = arith.constant 0 : index
    %c0_3 = arith.constant 0 : index
    %3 = vector.load %arg2[%c0, %c0_1, %c0_2, %c0_3] : memref<1x8x18x4xbf16, #tpu.memory_space<vmem>>, vector<1x8x18x4xbf16>
    %4 = vector.shape_cast %3 : vector<1x8x18x4xbf16> to vector<8x18x4xbf16>
    %5 = vector.extract_strided_slice %4 {offsets = [0, 0, 0], sizes = [6, 16, 4], strides = [1, 1, 1]} : vector<8x18x4xbf16> to vector<6x16x4xbf16>
    %6 = vector.shape_cast %5 : vector<6x16x4xbf16> to vector<96x4xbf16>
    %7 = vector.extract_strided_slice %4 {offsets = [0, 1, 0], sizes = [6, 16, 4], strides = [1, 1, 1]} : vector<8x18x4xbf16> to vector<6x16x4xbf16>
    %8 = vector.shape_cast %7 : vector<6x16x4xbf16> to vector<96x4xbf16>
    %9 = vector.extract_strided_slice %4 {offsets = [0, 2, 0], sizes = [6, 16, 4], strides = [1, 1, 1]} : vector<8x18x4xbf16> to vector<6x16x4xbf16>
    %10 = vector.shape_cast %9 : vector<6x16x4xbf16> to vector<96x4xbf16>
    %11 = vector.extract_strided_slice %4 {offsets = [1, 0, 0], sizes = [6, 16, 4], strides = [1, 1, 1]} : vector<8x18x4xbf16> to vector<6x16x4xbf16>
    %12 = vector.shape_cast %11 : vector<6x16x4xbf16> to vector<96x4xbf16>
    %13 = vector.extract_strided_slice %4 {offsets = [1, 1, 0], sizes = [6, 16, 4], strides = [1, 1, 1]} : vector<8x18x4xbf16> to vector<6x16x4xbf16>
    %14 = vector.shape_cast %13 : vector<6x16x4xbf16> to vector<96x4xbf16>
    %15 = vector.extract_strided_slice %4 {offsets = [1, 2, 0], sizes = [6, 16, 4], strides = [1, 1, 1]} : vector<8x18x4xbf16> to vector<6x16x4xbf16>
    %16 = vector.shape_cast %15 : vector<6x16x4xbf16> to vector<96x4xbf16>
    %17 = vector.extract_strided_slice %4 {offsets = [2, 0, 0], sizes = [6, 16, 4], strides = [1, 1, 1]} : vector<8x18x4xbf16> to vector<6x16x4xbf16>
    %18 = vector.shape_cast %17 : vector<6x16x4xbf16> to vector<96x4xbf16>
    %19 = vector.extract_strided_slice %4 {offsets = [2, 1, 0], sizes = [6, 16, 4], strides = [1, 1, 1]} : vector<8x18x4xbf16> to vector<6x16x4xbf16>
    %20 = vector.shape_cast %19 : vector<6x16x4xbf16> to vector<96x4xbf16>
    %21 = vector.extract_strided_slice %4 {offsets = [2, 2, 0], sizes = [6, 16, 4], strides = [1, 1, 1]} : vector<8x18x4xbf16> to vector<6x16x4xbf16>
    %22 = vector.shape_cast %21 : vector<6x16x4xbf16> to vector<96x4xbf16>
    %23 = tpu.concatenate %6, %8, %10, %12, %14, %16, %18, %20, %22 in 1 : vector<96x4xbf16>, vector<96x4xbf16>, vector<96x4xbf16>, vector<96x4xbf16>, vector<96x4xbf16>, vector<96x4xbf16>, vector<96x4xbf16>, vector<96x4xbf16>, vector<96x4xbf16> -> vector<96x36xbf16>
    %c0_4 = arith.constant 0 : index
    %c0_5 = arith.constant 0 : index
    %24 = vector.load %arg3[%c0_4, %c0_5] : memref<36x128xbf16, #tpu.memory_space<vmem>>, vector<36x128xbf16>
    %cst = arith.constant dense<0.000000e+00> : vector<96x128xf32>
    %25 = tpu.matmul %23, %24, %cst {dimension_numbers = #tpu.dot_dimension_numbers<[1], [0], [0], [1], [0, 0, 1, 1], [], []>} : vector<96x36xbf16>, vector<36x128xbf16>, vector<96x128xf32> -> vector<96x128xf32>
    %c0_6 = arith.constant 0 : index
    %c0_7 = arith.constant 0 : index
    %26 = vector.load %arg5[%c0_6, %c0_7] : memref<4x128xf32, #tpu.memory_space<vmem>>, vector<1x128xf32>
    %27 = vector.shape_cast %26 : vector<1x128xf32> to vector<128xf32>
    %28 = vector.shape_cast %27 : vector<128xf32> to vector<1x128xf32>
    %29 = vector.broadcast %28 : vector<1x128xf32> to vector<96x128xf32>
    %30 = arith.mulf %25, %29 : vector<96x128xf32>
    %c1 = arith.constant 1 : index
    %c0_8 = arith.constant 0 : index
    %31 = vector.load %arg5[%c1, %c0_8] : memref<4x128xf32, #tpu.memory_space<vmem>>, vector<1x128xf32>
    %32 = vector.shape_cast %31 : vector<1x128xf32> to vector<128xf32>
    %33 = vector.shape_cast %32 : vector<128xf32> to vector<1x128xf32>
    %34 = vector.broadcast %33 : vector<1x128xf32> to vector<96x128xf32>
    %35 = arith.addf %30, %34 : vector<96x128xf32>
    %cst_9 = arith.constant 0.000000e+00 : f32
    %36 = vector.broadcast %cst_9 : f32 to vector<96x128xf32>
    %37 = arith.cmpf ogt, %35, %36 : vector<96x128xf32>
    %cst_10 = arith.constant 0.00999999977 : f32
    %38 = vector.broadcast %cst_10 : f32 to vector<96x128xf32>
    %39 = arith.mulf %38, %35 : vector<96x128xf32>
    %40 = arith.select %37, %35, %39 : vector<96x128xi1>, vector<96x128xf32>
    %41 = vector.shape_cast %40 : vector<96x128xf32> to vector<6x16x128xf32>
    %42 = arith.truncf %41 : vector<6x16x128xf32> to vector<6x16x128xbf16>
    %c0_11 = arith.constant 0 : index
    %c1_12 = arith.constant 1 : index
    %c0_13 = arith.constant 0 : index
    %43 = vector.load %arg7[%c0_11, %c1_12, %c0_13] : memref<6x18x128xbf16, #tpu.memory_space<vmem>>, vector<6x16x128xbf16>
    tpu.vector_store %arg7[%c0_11, %c1_12, %c0_13], %42 {strides = array<i32>} : memref<6x18x128xbf16, #tpu.memory_space<vmem>>, vector<6x16x128xbf16>,
    %c0_i32_14 = arith.constant 0 : i32
    %44 = arith.cmpi eq, %arg1, %c0_i32_14 : i32
    %45 = arith.extui %44 : i1 to i32
    %c0_i32_15 = arith.constant 0 : i32
    %46 = arith.cmpi ne, %45, %c0_i32_15 : i32
    scf.if %46 {
      %cst_82 = arith.constant 0.000000e+00 : bf16
      %121 = vector.broadcast %cst_82 : bf16 to vector<1x16x128xbf16>
      %c0_83 = arith.constant 0 : index
      %c1_84 = arith.constant 1 : index
      %c0_85 = arith.constant 0 : index
      %122 = vector.load %arg7[%c0_83, %c1_84, %c0_85] : memref<6x18x128xbf16, #tpu.memory_space<vmem>>, vector<1x16x128xbf16>
      tpu.vector_store %arg7[%c0_83, %c1_84, %c0_85], %121 {strides = array<i32>} : memref<6x18x128xbf16, #tpu.memory_space<vmem>>, vector<1x16x128xbf16>,
    } else {
    }
    %c3_i32 = arith.constant 3 : i32
    %47 = arith.cmpi eq, %arg1, %c3_i32 : i32
    %48 = arith.extui %47 : i1 to i32
    %c0_i32_16 = arith.constant 0 : i32
    %49 = arith.cmpi ne, %48, %c0_i32_16 : i32
    scf.if %49 {
      %cst_82 = arith.constant 0.000000e+00 : bf16
      %121 = vector.broadcast %cst_82 : bf16 to vector<1x16x128xbf16>
      %c5_83 = arith.constant 5 : index
      %c1_84 = arith.constant 1 : index
      %c0_85 = arith.constant 0 : index
      %122 = vector.load %arg7[%c5_83, %c1_84, %c0_85] : memref<6x18x128xbf16, #tpu.memory_space<vmem>>, vector<1x16x128xbf16>
      tpu.vector_store %arg7[%c5_83, %c1_84, %c0_85], %121 {strides = array<i32>} : memref<6x18x128xbf16, #tpu.memory_space<vmem>>, vector<1x16x128xbf16>,
    } else {
    }
    %c0_17 = arith.constant 0 : index
    %c0_18 = arith.constant 0 : index
    %c0_19 = arith.constant 0 : index
    %50 = vector.load %arg7[%c0_17, %c0_18, %c0_19] : memref<6x18x128xbf16, #tpu.memory_space<vmem>>, vector<4x16x128xbf16>
    %51 = vector.shape_cast %50 : vector<4x16x128xbf16> to vector<64x128xbf16>
    %c0_20 = arith.constant 0 : index
    %c0_21 = arith.constant 0 : index
    %c0_22 = arith.constant 0 : index
    %52 = vector.load %arg4[%c0_20, %c0_21, %c0_22] : memref<9x128x128xbf16, #tpu.memory_space<vmem>>, vector<1x128x128xbf16>
    %53 = vector.shape_cast %52 : vector<1x128x128xbf16> to vector<128x128xbf16>
    %cst_23 = arith.constant dense<0.000000e+00> : vector<64x128xf32>
    %54 = tpu.matmul %51, %53, %cst_23 {dimension_numbers = #tpu.dot_dimension_numbers<[1], [0], [0], [1], [0, 0, 1, 1], [], []>} : vector<64x128xbf16>, vector<128x128xbf16>, vector<64x128xf32> -> vector<64x128xf32>
    %c0_24 = arith.constant 0 : index
    %c1_25 = arith.constant 1 : index
    %c0_26 = arith.constant 0 : index
    %55 = vector.load %arg7[%c0_24, %c1_25, %c0_26] : memref<6x18x128xbf16, #tpu.memory_space<vmem>>, vector<4x16x128xbf16>
    %56 = vector.shape_cast %55 : vector<4x16x128xbf16> to vector<64x128xbf16>
    %c1_27 = arith.constant 1 : index
    %c0_28 = arith.constant 0 : index
    %c0_29 = arith.constant 0 : index
    %57 = vector.load %arg4[%c1_27, %c0_28, %c0_29] : memref<9x128x128xbf16, #tpu.memory_space<vmem>>, vector<1x128x128xbf16>
    %58 = vector.shape_cast %57 : vector<1x128x128xbf16> to vector<128x128xbf16>
    %cst_30 = arith.constant dense<0.000000e+00> : vector<64x128xf32>
    %59 = tpu.matmul %56, %58, %cst_30 {dimension_numbers = #tpu.dot_dimension_numbers<[1], [0], [0], [1], [0, 0, 1, 1], [], []>} : vector<64x128xbf16>, vector<128x128xbf16>, vector<64x128xf32> -> vector<64x128xf32>
    %60 = arith.addf %54, %59 : vector<64x128xf32>
    %c0_31 = arith.constant 0 : index
    %c2 = arith.constant 2 : index
    %c0_32 = arith.constant 0 : index
    %61 = vector.load %arg7[%c0_31, %c2, %c0_32] : memref<6x18x128xbf16, #tpu.memory_space<vmem>>, vector<4x16x128xbf16>
    %62 = vector.shape_cast %61 : vector<4x16x128xbf16> to vector<64x128xbf16>
    %c2_33 = arith.constant 2 : index
    %c0_34 = arith.constant 0 : index
    %c0_35 = arith.constant 0 : index
    %63 = vector.load %arg4[%c2_33, %c0_34, %c0_35] : memref<9x128x128xbf16, #tpu.memory_space<vmem>>, vector<1x128x128xbf16>
    %64 = vector.shape_cast %63 : vector<1x128x128xbf16> to vector<128x128xbf16>
    %cst_36 = arith.constant dense<0.000000e+00> : vector<64x128xf32>
    %65 = tpu.matmul %62, %64, %cst_36 {dimension_numbers = #tpu.dot_dimension_numbers<[1], [0], [0], [1], [0, 0, 1, 1], [], []>} : vector<64x128xbf16>, vector<128x128xbf16>, vector<64x128xf32> -> vector<64x128xf32>
    %66 = arith.addf %60, %65 : vector<64x128xf32>
    %c1_37 = arith.constant 1 : index
    %c0_38 = arith.constant 0 : index
    %c0_39 = arith.constant 0 : index
    %67 = vector.load %arg7[%c1_37, %c0_38, %c0_39] : memref<6x18x128xbf16, #tpu.memory_space<vmem>>, vector<4x16x128xbf16>
    %68 = vector.shape_cast %67 : vector<4x16x128xbf16> to vector<64x128xbf16>
    %c3 = arith.constant 3 : index
    %c0_40 = arith.constant 0 : index
    %c0_41 = arith.constant 0 : index
    %69 = vector.load %arg4[%c3, %c0_40, %c0_41] : memref<9x128x128xbf16, #tpu.memory_space<vmem>>, vector<1x128x128xbf16>
    %70 = vector.shape_cast %69 : vector<1x128x128xbf16> to vector<128x128xbf16>
    %cst_42 = arith.constant dense<0.000000e+00> : vector<64x128xf32>
    %71 = tpu.matmul %68, %70, %cst_42 {dimension_numbers = #tpu.dot_dimension_numbers<[1], [0], [0], [1], [0, 0, 1, 1], [], []>} : vector<64x128xbf16>, vector<128x128xbf16>, vector<64x128xf32> -> vector<64x128xf32>
    %72 = arith.addf %66, %71 : vector<64x128xf32>
    %c1_43 = arith.constant 1 : index
    %c1_44 = arith.constant 1 : index
    %c0_45 = arith.constant 0 : index
    %73 = vector.load %arg7[%c1_43, %c1_44, %c0_45] : memref<6x18x128xbf16, #tpu.memory_space<vmem>>, vector<4x16x128xbf16>
    %74 = vector.shape_cast %73 : vector<4x16x128xbf16> to vector<64x128xbf16>
    %c4 = arith.constant 4 : index
    %c0_46 = arith.constant 0 : index
    %c0_47 = arith.constant 0 : index
    %75 = vector.load %arg4[%c4, %c0_46, %c0_47] : memref<9x128x128xbf16, #tpu.memory_space<vmem>>, vector<1x128x128xbf16>
    %76 = vector.shape_cast %75 : vector<1x128x128xbf16> to vector<128x128xbf16>
    %cst_48 = arith.constant dense<0.000000e+00> : vector<64x128xf32>
    %77 = tpu.matmul %74, %76, %cst_48 {dimension_numbers = #tpu.dot_dimension_numbers<[1], [0], [0], [1], [0, 0, 1, 1], [], []>} : vector<64x128xbf16>, vector<128x128xbf16>, vector<64x128xf32> -> vector<64x128xf32>
    %78 = arith.addf %72, %77 : vector<64x128xf32>
    %c1_49 = arith.constant 1 : index
    %c2_50 = arith.constant 2 : index
    %c0_51 = arith.constant 0 : index
    %79 = vector.load %arg7[%c1_49, %c2_50, %c0_51] : memref<6x18x128xbf16, #tpu.memory_space<vmem>>, vector<4x16x128xbf16>
    %80 = vector.shape_cast %79 : vector<4x16x128xbf16> to vector<64x128xbf16>
    %c5 = arith.constant 5 : index
    %c0_52 = arith.constant 0 : index
    %c0_53 = arith.constant 0 : index
    %81 = vector.load %arg4[%c5, %c0_52, %c0_53] : memref<9x128x128xbf16, #tpu.memory_space<vmem>>, vector<1x128x128xbf16>
    %82 = vector.shape_cast %81 : vector<1x128x128xbf16> to vector<128x128xbf16>
    %cst_54 = arith.constant dense<0.000000e+00> : vector<64x128xf32>
    %83 = tpu.matmul %80, %82, %cst_54 {dimension_numbers = #tpu.dot_dimension_numbers<[1], [0], [0], [1], [0, 0, 1, 1], [], []>} : vector<64x128xbf16>, vector<128x128xbf16>, vector<64x128xf32> -> vector<64x128xf32>
    %84 = arith.addf %78, %83 : vector<64x128xf32>
    %c2_55 = arith.constant 2 : index
    %c0_56 = arith.constant 0 : index
    %c0_57 = arith.constant 0 : index
    %85 = vector.load %arg7[%c2_55, %c0_56, %c0_57] : memref<6x18x128xbf16, #tpu.memory_space<vmem>>, vector<4x16x128xbf16>
    %86 = vector.shape_cast %85 : vector<4x16x128xbf16> to vector<64x128xbf16>
    %c6 = arith.constant 6 : index
    %c0_58 = arith.constant 0 : index
    %c0_59 = arith.constant 0 : index
    %87 = vector.load %arg4[%c6, %c0_58, %c0_59] : memref<9x128x128xbf16, #tpu.memory_space<vmem>>, vector<1x128x128xbf16>
    %88 = vector.shape_cast %87 : vector<1x128x128xbf16> to vector<128x128xbf16>
    %cst_60 = arith.constant dense<0.000000e+00> : vector<64x128xf32>
    %89 = tpu.matmul %86, %88, %cst_60 {dimension_numbers = #tpu.dot_dimension_numbers<[1], [0], [0], [1], [0, 0, 1, 1], [], []>} : vector<64x128xbf16>, vector<128x128xbf16>, vector<64x128xf32> -> vector<64x128xf32>
    %90 = arith.addf %84, %89 : vector<64x128xf32>
    %c2_61 = arith.constant 2 : index
    %c1_62 = arith.constant 1 : index
    %c0_63 = arith.constant 0 : index
    %91 = vector.load %arg7[%c2_61, %c1_62, %c0_63] : memref<6x18x128xbf16, #tpu.memory_space<vmem>>, vector<4x16x128xbf16>
    %92 = vector.shape_cast %91 : vector<4x16x128xbf16> to vector<64x128xbf16>
    %c7 = arith.constant 7 : index
    %c0_64 = arith.constant 0 : index
    %c0_65 = arith.constant 0 : index
    %93 = vector.load %arg4[%c7, %c0_64, %c0_65] : memref<9x128x128xbf16, #tpu.memory_space<vmem>>, vector<1x128x128xbf16>
    %94 = vector.shape_cast %93 : vector<1x128x128xbf16> to vector<128x128xbf16>
    %cst_66 = arith.constant dense<0.000000e+00> : vector<64x128xf32>
    %95 = tpu.matmul %92, %94, %cst_66 {dimension_numbers = #tpu.dot_dimension_numbers<[1], [0], [0], [1], [0, 0, 1, 1], [], []>} : vector<64x128xbf16>, vector<128x128xbf16>, vector<64x128xf32> -> vector<64x128xf32>
    %96 = arith.addf %90, %95 : vector<64x128xf32>
    %c2_67 = arith.constant 2 : index
    %c2_68 = arith.constant 2 : index
    %c0_69 = arith.constant 0 : index
    %97 = vector.load %arg7[%c2_67, %c2_68, %c0_69] : memref<6x18x128xbf16, #tpu.memory_space<vmem>>, vector<4x16x128xbf16>
    %98 = vector.shape_cast %97 : vector<4x16x128xbf16> to vector<64x128xbf16>
    %c8 = arith.constant 8 : index
    %c0_70 = arith.constant 0 : index
    %c0_71 = arith.constant 0 : index
    %99 = vector.load %arg4[%c8, %c0_70, %c0_71] : memref<9x128x128xbf16, #tpu.memory_space<vmem>>, vector<1x128x128xbf16>
    %100 = vector.shape_cast %99 : vector<1x128x128xbf16> to vector<128x128xbf16>
    %cst_72 = arith.constant dense<0.000000e+00> : vector<64x128xf32>
    %101 = tpu.matmul %98, %100, %cst_72 {dimension_numbers = #tpu.dot_dimension_numbers<[1], [0], [0], [1], [0, 0, 1, 1], [], []>} : vector<64x128xbf16>, vector<128x128xbf16>, vector<64x128xf32> -> vector<64x128xf32>
    %102 = arith.addf %96, %101 : vector<64x128xf32>
    %c2_73 = arith.constant 2 : index
    %c0_74 = arith.constant 0 : index
    %103 = vector.load %arg5[%c2_73, %c0_74] : memref<4x128xf32, #tpu.memory_space<vmem>>, vector<1x128xf32>
    %104 = vector.shape_cast %103 : vector<1x128xf32> to vector<128xf32>
    %105 = vector.shape_cast %104 : vector<128xf32> to vector<1x128xf32>
    %106 = vector.broadcast %105 : vector<1x128xf32> to vector<64x128xf32>
    %107 = arith.mulf %102, %106 : vector<64x128xf32>
    %c3_75 = arith.constant 3 : index
    %c0_76 = arith.constant 0 : index
    %108 = vector.load %arg5[%c3_75, %c0_76] : memref<4x128xf32, #tpu.memory_space<vmem>>, vector<1x128xf32>
    %109 = vector.shape_cast %108 : vector<1x128xf32> to vector<128xf32>
    %110 = vector.shape_cast %109 : vector<128xf32> to vector<1x128xf32>
    %111 = vector.broadcast %110 : vector<1x128xf32> to vector<64x128xf32>
    %112 = arith.addf %107, %111 : vector<64x128xf32>
    %cst_77 = arith.constant 0.000000e+00 : f32
    %113 = vector.broadcast %cst_77 : f32 to vector<64x128xf32>
    %114 = arith.cmpf ogt, %112, %113 : vector<64x128xf32>
    %cst_78 = arith.constant 0.00999999977 : f32
    %115 = vector.broadcast %cst_78 : f32 to vector<64x128xf32>
    %116 = arith.mulf %115, %112 : vector<64x128xf32>
    %117 = arith.select %114, %112, %116 : vector<64x128xi1>, vector<64x128xf32>
    %c0_79 = arith.constant 0 : index
    %c0_80 = arith.constant 0 : index
    %c0_81 = arith.constant 0 : index
    %118 = vector.load %arg6[%c0_79, %c0_80, %c0_81] : memref<1x64x128xf32, #tpu.memory_space<vmem>>, vector<1x64x128xf32>
    %119 = vector.shape_cast %118 : vector<1x64x128xf32> to vector<64x128xf32>
    %120 = vector.shape_cast %117 : vector<64x128xf32> to vector<1x64x128xf32>
    tpu.vector_store %arg6[%c0_79, %c0_80, %c0_81], %120 {strides = array<i32>} : memref<1x64x128xf32, #tpu.memory_space<vmem>>, vector<1x64x128xf32>,
    return
  }
  func.func @transform_0(%arg0: i32, %arg1: i32) -> (i32, i32, i32, i32) {
    %c4_i32 = arith.constant 4 : i32
    %0 = arith.muli %arg0, %c4_i32 : i32
    %1 = arith.addi %0, %arg1 : i32
    %c0_i32 = arith.constant 0 : i32
    %c0_i32_0 = arith.constant 0 : i32
    %c0_i32_1 = arith.constant 0 : i32
    %c0_i32_2 = arith.constant 0 : i32
    return %1, %c0_i32, %c0_i32_0, %c0_i32_1 : i32, i32, i32, i32
  }
  func.func @transform_1(%arg0: i32, %arg1: i32) -> (i32, i32) {
    %c0_i32 = arith.constant 0 : i32
    %c0_i32_0 = arith.constant 0 : i32
    %c0_i32_1 = arith.constant 0 : i32
    return %c0_i32, %c0_i32_0 : i32, i32
  }
  func.func @transform_2(%arg0: i32, %arg1: i32) -> (i32, i32, i32) {
    %c0_i32 = arith.constant 0 : i32
    %c0_i32_0 = arith.constant 0 : i32
    %c0_i32_1 = arith.constant 0 : i32
    %c0_i32_2 = arith.constant 0 : i32
    return %c0_i32, %c0_i32_0, %c0_i32_1 : i32, i32, i32
  }
  func.func @transform_3(%arg0: i32, %arg1: i32) -> (i32, i32) {
    %c0_i32 = arith.constant 0 : i32
    %c0_i32_0 = arith.constant 0 : i32
    %c0_i32_1 = arith.constant 0 : i32
    return %c0_i32, %c0_i32_0 : i32, i32
  }
  func.func @transform_4(%arg0: i32, %arg1: i32) -> (i32, i32, i32) {
    %c0_i32 = arith.constant 0 : i32
    %c0_i32_0 = arith.constant 0 : i32
    return %arg0, %arg1, %c0_i32 : i32, i32, i32
  }
}

</mosaic_0001>

<bundles_post_ra>
// kernel: _lambda_.1
= control target key start
LH: loop header
LB: loop body
LE: loop exit
PB: predicated region body
PF: predicated region fallthrough
CT: control target
= control target key end

     0   :  { %s3667_s15 = smov 0   ;;  %s3669_s16 = smov 0   ;;  %s4638_s0 = inlined_call_operand.vmem [shape: bf16[8,8,18,4], index: 0, kind: input, shape index: {}]   ;;  %s4639_s1 = inlined_call_operand.vmem [shape: bf16[36,128], index: 1, kind: input, shape index: {}]   ;;  %s4640_s2 = inlined_call_operand.vmem [shape: bf16[9,128,128], index: 2, kind: input, shape index: {}]   ;;  %s4641_s3 = inlined_call_operand.vmem [shape: f32[4,128], index: 3, kind: input, shape index: {}]   ;;  %s4642_s4 = inlined_call_operand.vmem [shape: f32[2,256,128], index: 4, kind: output, shape index: {}]  }
   0x1   :  { %s3671_s17 = smov 0   ;;  %s3673_s18 = smov 0  }
   0x2   :  { %s3675_s19 = smov 0  }
   0x3 LB: > { %s23_s20 = sadd.s32 1, %s3622_s17  ;;  %s26_s21 = sadd.s32 1, %s3626_s18  ;;  %s3630_s19 = sphi %s3675_s19, %s14_s19   ;;  %s3626_s18 = sphi %s3673_s18, %s4660_s18   ;;  %s3622_s17 = sphi %s3671_s17, %s4659_s17   ;;  %s3618_s16 = sphi %s3669_s16, %s4658_s16   ;;  %s3614_s15 = sphi %s3667_s15, %s4657_s15  }
   0x4   : > { %p24_p0 = scmp.ge.s32.totalorder %s23_s20, 4  ;;  %p2886_p1 = scmp.ge.s32.totalorder %s3630_s19, 1 }
   0x5   : > { %p184_p2 = scmp.lt.s32.totalorder %s3630_s19, 9 }
   0x6   : > { %s4662_s20 = smov (%p24_p0, %s23_s20), 0  ;;  %s4664_s21 = smov (!%p24_p0, %s26_s21), %s3626_s18 }
   0x7   : > { %p185_p3 = pnand %p2886_p1, %p184_p2  ;;  %p28_p4 = scmp.ge.s32.totalorder %s4664_s21, 2 }
   0x8   : > { %s2887_s22 = sshll.u32 (!%p185_p3), %s3618_s16, 2  ;;  %s2889_s23 = sshll.u32 (!%p185_p3), %s3614_s15, 3 }
   0x9   : > { %s4666_s21 = smov (%p28_p4, %s4664_s21), 0  ;;  %188 = sbr.rel (%p185_p3) target bundleno = 784 (0x310), region = 36 }
   0xa   : > { %s217_s24 = sadd.s32 (!%p185_p3), %s3614_s15, %s2887_s22  ;;  %p226_p5 = scmp.lt.s32.totalorder (!%p185_p3), %s3618_s16, 1 }
   0xb   : > { %p218_p6 = scmp.lt.s32.totalorder (!%p185_p3), %s217_s24, 7  ;;  %p228_p7 = scmp.lt.s32.totalorder (!%p185_p3), %s2889_s23, 31 }
   0xc   : > { %p2892_p8 = scmp.ne.s32.totalorder (!%p185_p3), %s3614_s15, 0 }
   0xe   : > { %s4668_s16 = smov (!%p226_p5, %s3618_s16), 1  ;;  %s4670_s24 = smov (!%p218_p6, %s217_s24), 7 }
   0xf   : > { %s4672_s23 = smov (!%p228_p7, %s2889_s23), 31  ;;  %s3537_s25 = smul.u32 96, %s4670_s24 }
  0x10   : > { %s2890_s26 = sshll.u32 %s4668_s16, 5  ;;  %239 = sbr.rel (%p2892_p8) target bundleno = 36 (0x24), region = 40 }
  0x11   : > { %s231_s27 = sadd.s32 %s2890_s26, %s4672_s23  ;;  %s3704_s30 = scalar_lea.vmem %s4638_s0, %s3537_s25 }
  0x12   : > { %s2891_s5 = sshll.u32 %s231_s27, 3 }
  0x13   : > { %s3709_s8 = scalar_lea.vmem %s4642_s4, %s2891_s5 }
  0x15   : > { %vm240_vm0 = vcmask 1040384   ;;  %vm241_vm1 = vsmask.f32 256  ;;  %v243_v0 = vld [vmem:[#allocation2] sm:$0x1] }
  0x16   : > { %vm3714_vm2 = vmand %vm240_vm0, %vm241_vm1  ;;  %v246_v2 = vld [vmem:[#allocation2 + $0xc] sm:$0x1]  ;;  %v249_v3 = vld [vmem:[#allocation2 + $0x18] sm:$0x1]  ;;  %vm261_vm3 = vsmask.f32 7938 }
  0x17   : > { %v244_v4 = vsel %vm3714_vm2, 0, %v243_v0  ;;  %v247_v5 = vsel %vm3714_vm2, 0, %v246_v2  ;;  %v250_v6 = vsel %vm3714_vm2, 0, %v249_v3  ;;  %v252_v7 = vld [vmem:[#allocation2 + $0x24] sm:$0x1]  ;;  %vm3726_vm4 = vmand %vm240_vm0, %vm261_vm3 }
  0x18   : > { %245 = vst [vmem:[#allocation2] sm:$0x1] %v244_v4  ;;  %v253_v8 = vsel %vm3714_vm2, 0, %v252_v7  ;;  %v255_v9 = vld [vmem:[#allocation2 + $0x30] sm:$0x1] }
  0x19   : > { %248 = vst [vmem:[#allocation2 + $0xc] sm:$0x1] %v247_v5  ;;  %v256_v11 = vsel %vm3714_vm2, 0, %v255_v9  ;;  %v258_v12 = vld [vmem:[#allocation2 + $0x3c] sm:$0x1] }
  0x1a   : > { %251 = vst [vmem:[#allocation2 + $0x18] sm:$0x1] %v250_v6  ;;  %v259_v13 = vsel %vm3714_vm2, 0, %v258_v12  ;;  %v263_v14 = vld [vmem:[#allocation2 + $0x8] sm:$0x1] }
  0x1b   : > { %254 = vst [vmem:[#allocation2 + $0x24] sm:$0x1] %v253_v8  ;;  %v264_v15 = vsel %vm3726_vm4, 0, %v263_v14  ;;  %v266_v16 = vld [vmem:[#allocation2 + $0x14] sm:$0x1] }
  0x1c   : > { %257 = vst [vmem:[#allocation2 + $0x30] sm:$0x1] %v256_v11  ;;  %v267_v17 = vsel %vm3726_vm4, 0, %v266_v16  ;;  %v269_v18 = vld [vmem:[#allocation2 + $0x20] sm:$0x1] }
  0x1d   : > { %260 = vst [vmem:[#allocation2 + $0x3c] sm:$0x1] %v259_v13  ;;  %v270_v19 = vsel %vm3726_vm4, 0, %v269_v18  ;;  %v272_v20 = vld [vmem:[#allocation2 + $0x2c] sm:$0x1] }
  0x1e   : > { %265 = vst [vmem:[#allocation2 + $0x8] sm:$0x1] %v264_v15  ;;  %v273_v21 = vsel %vm3726_vm4, 0, %v272_v20  ;;  %v275_v22 = vld [vmem:[#allocation2 + $0x38] sm:$0x1] }
  0x1f   : > { %268 = vst [vmem:[#allocation2 + $0x14] sm:$0x1] %v267_v17  ;;  %v276_v23 = vsel %vm3726_vm4, 0, %v275_v22  ;;  %v278_v24 = vld [vmem:[#allocation2 + $0x44] sm:$0x1] }
  0x20   : > { %271 = vst [vmem:[#allocation2 + $0x20] sm:$0x1] %v270_v19  ;;  %v279_v25 = vsel %vm3726_vm4, 0, %v278_v24 }
  0x21   : > { %274 = vst [vmem:[#allocation2 + $0x2c] sm:$0x1] %v273_v21 }
  0x22   : > { %277 = vst [vmem:[#allocation2 + $0x38] sm:$0x1] %v276_v23 }
  0x23   : > { %280 = vst [vmem:[#allocation2 + $0x44] sm:$0x1] %v279_v25 }
  0x24 PF: > { %v281_v26 = vld [vmem:[%s3704_s30] sm:$0xf]  ;;  %v282_v27 = vld [vmem:[%s3704_s30 + $0x4] sm:$0xf]  ;;  %v283_v28 = vld [vmem:[%s3704_s30 + $0x8] sm:$0x1] }
  0x25   : > { %v322_v29 = vshrl.u32 %v282_v27, 16  ;;  %v328_v30 = vshll.u32 %v283_v28, 16  ;;  %vm470_vm5 = vcmask 1042432   ;;  %vm471_vm6 = vcmask 1046532   ;;  %v3750_v31 = vld [vmem:[%s3704_s30 + $0xc] sm:$0xff]  ;;  %s3632_s9 = smov 12  }
  0x26   : > { %vm3752_vm7 = vmor %vm470_vm5, %vm471_vm6  ;;  %v2893_v33 = vrot.slane %v281_v26, 9  ;;  %v475_v34 = vrot.slane %v282_v27, 5  ;;  %v478_v35 = vrot.slane %v283_v28, 5  ;;  %v309_v36 = vshrl.u32 %v281_v26, 16  ;;  %664 = vrot.lane.b32.xlu1 %v3750_v31, %s3632_s9  ;;  %v3761_v43 = vld [vmem:[%s3704_s30 + $0xc] sm:$0xf] }
  0x27   : > { %v312_v37 = vshll.u32 %v281_v26, 16  ;;  %vm305_vm8 = vsmask.f32 3328  ;;  %vm306_vm9 = vsmask.f32 7440  ;;  %v318_v38 = vshll.u32 %v282_v27, 16 }
  0x28   : > { %v476_v39 = vsel %vm3752_vm7, %v2893_v33, %v475_v34  ;;  %v477_v40 = vrot.slane %v475_v34, 4  ;;  %v311_v41 = vrot.slane %v309_v36, 4  ;;  %v324_v42 = vrot.slane %v322_v29, 4  ;;  %v3764_v48 = vld [vmem:[%s3704_s30 + $0x10] sm:$0xf]  ;;  %v3777_v59 = vld [vmem:[%s3704_s30 + $0x18] sm:$0xff]  ;;  %vm3781_vm10 = vmor %vm305_vm8, %vm306_vm9 }
  0x29   : > { %v631_v44 = vunpack.c.l.b16 %v476_v39  ;;  %v314_v45 = vrot.slane %v312_v37, 5  ;;  %v320_v46 = vrot.slane %v318_v38, 5  ;;  %v330_v47 = vrot.slane %v328_v30, 5  ;;  %v3769_v50 = vld [vmem:[%s3704_s30 + $0x14] sm:$0x1]  ;;  %s3633_s10 = smov 24  }
  0x2a   : > { %v479_v49 = vsel %vm3752_vm7, %v477_v40, %v478_v35  ;;  %v333_v51 = vshrl.u32 %v3761_v43, 16  ;;  %v336_v52 = vshll.u32 %v3761_v43, 16  ;;  %v342_v53 = vshll.u32 %v3764_v48, 16  ;;  %v287_v58 = vld [vmem:[%s3704_s30 + $0x18] sm:$0xf]  ;;  %709 = vrot.lane.b32.xlu2 %v3777_v59, %s3633_s10  ;;  %s3634_s11 = smov 8  }
  0x2b   : > { %v632_v54 = vunpack.c.l.b16 %v479_v49  ;;  %v315_v55 = vor.u32 %v314_v45, %v311_v41  ;;  %v325_v56 = vor.u32 %v324_v42, %v320_v46  ;;  %v346_v57 = vshrl.u32 %v3764_v48, 16  ;;  %v288_v1 = vld [vmem:[%s3704_s30 + $0x1c] sm:$0xf]  ;;  %v289_v13 = vld [vmem:[%s3704_s30 + $0x20] sm:$0x1]  ;;  %s3635_s12 = smov 4  }
  0x2c   : > { %v335_v61 = vrot.slane %v333_v51, 4  ;;  %v338_v62 = vrot.slane %v336_v52, 5  ;;  %v344_v63 = vrot.slane %v342_v53, 5  ;;  %v352_v0 = vshll.u32 %v3769_v50, 16  ;;  %s3636_s13 = smov 16   ;;  %s3637_s14 = smov 28  }
  0x2d   : > { %v643_v2 = vpack.c.b16 %v632_v54, %v631_v44  ;;  %v316_v3 = vrot.slane %v315_v55, 4  ;;  %v326_v4 = vrot.slane %v325_v56, 4  ;;  %v348_v5 = vrot.slane %v346_v57, 4  ;;  %s3638_s16 = smov 20   ;;  %s3639_s22 = smov 32  }
  0x2e   : > { %v339_v6 = vor.u32 %v338_v62, %v335_v61  ;;  %v354_v7 = vrot.slane %v352_v0, 5  ;;  %v357_v8 = vshrl.u32 %v287_v58, 16  ;;  %v360_v9 = vshll.u32 %v287_v58, 16  ;;  %v291_v0 = vld [vmem:[%s3704_s30 + $0x28] sm:$0xf] }
  0x2f   : > { %649 = vrot.lane.b32.xlu0 %v643_v2, %s3634_s11  ;;  %v321_v10 = vsel %vm3781_vm10, %v316_v3, %v320_v46  ;;  %v331_v11 = vsel %vm3781_vm10, %v326_v4, %v330_v47  ;;  %v349_v12 = vor.u32 %v348_v5, %v344_v63  ;;  %v366_v14 = vshll.u32 %v288_v1, 16 }
  0x30   : > { %v601_v15 = vunpack.c.l.b16 %v321_v10  ;;  %v602_v16 = vunpack.c.l.b16 %v331_v11  ;;  %v340_v17 = vrot.slane %v339_v6, 4  ;;  %v359_v18 = vrot.slane %v357_v8, 4  ;;  %v292_v10 = vld [vmem:[%s3704_s30 + $0x2c] sm:$0x1] }
  0x31   : > { %v350_v19 = vrot.slane %v349_v12, 4  ;;  %v362_v20 = vrot.slane %v360_v9, 5  ;;  %v368_v21 = vrot.slane %v366_v14, 5  ;;  %v370_v22 = vshrl.u32 %v288_v1, 16 }
  0x32   : > { %v613_v23 = vpack.c.b16 %v602_v16, %v601_v15  ;;  %v345_v24 = vsel %vm3781_vm10, %v340_v17, %v344_v63  ;;  %v376_v25 = vshll.u32 %v289_v13, 16  ;;  %v2895_v26 = vrot.slane %v287_v58, 9  ;;  %v290_v63 = vld [vmem:[%s3704_s30 + $0x24] sm:$0xf]  ;;  %v293_v17 = vld [vmem:[%s3704_s30 + $0x30] sm:$0xf] }
  0x33   : > { %v355_v27 = vsel %vm3781_vm10, %v350_v19, %v354_v7  ;;  %v603_v28 = vunpack.c.l.b16 %v345_v24  ;;  %v363_v29 = vor.u32 %v362_v20, %v359_v18  ;;  %v372_v30 = vrot.slane %v370_v22, 4  ;;  %v294_v18 = vld [vmem:[%s3704_s30 + $0x34] sm:$0xf]  ;;  %v3836_v24 = vld [vmem:[%s3704_s30 + $0x24] sm:$0xff] }
  0x34   : > { %v604_v33 = vunpack.c.l.b16 %v355_v27  ;;  %v378_v34 = vrot.slane %v376_v25, 5  ;;  %v489_v35 = vrot.slane %v288_v1, 5  ;;  %v492_v36 = vrot.slane %v289_v13, 5 }
  0x35   : > { %v364_v37 = vrot.slane %v363_v29, 4  ;;  %v373_v38 = vor.u32 %v372_v30, %v368_v21  ;;  %v2894_v39 = vrot.slane %v3761_v43, 9  ;;  %v482_v40 = vrot.slane %v3764_v48, 5 }
  0x36   : > { %v614_v41 = vpack.c.b16 %v604_v33, %v603_v28  ;;  %v490_v42 = vsel %vm3752_vm7, %v2895_v26, %v489_v35  ;;  %v491_v44 = vrot.slane %v489_v35, 4  ;;  %v485_v45 = vrot.slane %v3769_v50, 5 }
  0x37   : > { %619 = vrot.lane.b32.xlu0 %v613_v23, %s3635_s12  ;;  %v369_v46 = vsel %vm3781_vm10, %v364_v37, %v368_v21  ;;  %v374_v47 = vrot.slane %v373_v38, 4  ;;  %v483_v49 = vsel %vm3752_vm7, %v2894_v39, %v482_v40  ;;  %v635_v50 = vunpack.c.l.b16 %v490_v42 }
  0x38   : > { %679 = vrot.lane.b32.xlu1 %v614_v41, %s3636_s13  ;;  %v605_v43 = vunpack.c.l.b16 %v369_v46  ;;  %v493_v48 = vsel %vm3752_vm7, %v491_v44, %v492_v36  ;;  %v484_v51 = vrot.slane %v482_v40, 4  ;;  %v633_v54 = vunpack.c.l.b16 %v483_v49 }
  0x39   : > { %v379_v52 = vsel %vm3781_vm10, %v374_v47, %v378_v34  ;;  %v636_v53 = vunpack.c.l.b16 %v493_v48  ;;  %v381_v1 = vshrl.u32 %v290_v63, 16  ;;  %v384_v2 = vshll.u32 %v290_v63, 16 }
  0x3a   : > { %v606_v55 = vunpack.c.l.b16 %v379_v52  ;;  %v486_v56 = vsel %vm3752_vm7, %v484_v51, %v485_v45  ;;  %v390_v3 = vshll.u32 %v291_v0, 16  ;;  %v394_v4 = vshrl.u32 %v291_v0, 16 }
  0x3b   : > { %v634_v57 = vunpack.c.l.b16 %v486_v56  ;;  %v3816_v61 = vpack.c.b16 %v636_v53, %v635_v50  ;;  %v383_v5 = vrot.slane %v381_v1, 4  ;;  %v386_v6 = vrot.slane %v384_v2, 5  ;;  %v297_v56 = vld [vmem:[%s3704_s30 + $0x40] sm:$0xf] }
  0x3c   : > { %v615_v58 = vpack.c.b16 %v606_v55, %v605_v43  ;;  %v392_v7 = vrot.slane %v390_v3, 5  ;;  %v396_v8 = vrot.slane %v394_v4, 4  ;;  %v496_v9 = vrot.slane %v291_v0, 5  ;;  %v296_v55 = vld [vmem:[%s3704_s30 + $0x3c] sm:$0xf] }
  0x3d   : > { %v644_v62 = vpack.c.b16 %v634_v57, %v633_v54  ;;  %v387_v11 = vor.u32 %v386_v6, %v383_v5  ;;  %v400_v13 = vshll.u32 %v292_v10, 16  ;;  %v2896_v14 = vrot.slane %v290_v63, 9  ;;  %v3863_v63 = vld [vmem:[%s3704_s30 + $0x30] sm:$0xff] }
  0x3e   : > { %v397_v12 = vor.u32 %v396_v8, %v392_v7  ;;  %v498_v15 = vrot.slane %v496_v9, 4  ;;  %v499_v16 = vrot.slane %v292_v10, 5  ;;  %v405_v25 = vshrl.u32 %v293_v17, 16 }
  0x3f   : > { %724 = vrot.lane.b32.xlu0 %v615_v58, %s3637_s14  ;;  %694 = vrot.lane.b32.xlu2 %v644_v62, %s3638_s16  ;;  %v388_v19 = vrot.slane %v387_v11, 4  ;;  %v402_v21 = vrot.slane %v400_v13, 5  ;;  %v497_v22 = vsel %vm3752_vm7, %v2896_v14, %v496_v9  ;;  %v408_v26 = vshll.u32 %v293_v17, 16 }
  0x40   : > { %739 = vrot.lane.b32.xlu1 %v3816_v61, %s3639_s22  ;;  %v398_v20 = vrot.slane %v397_v12, 4  ;;  %v500_v23 = vsel %vm3752_vm7, %v498_v15, %v499_v16  ;;  %v414_v27 = vshll.u32 %v294_v18, 16  ;;  %v418_v28 = vshrl.u32 %v294_v18, 16  ;;  %v298_v12 = vld [vmem:[%s3704_s30 + $0x44] sm:$0x1] }
  0x41   : > { %v393_v29 = vsel %vm3781_vm10, %v388_v19, %v392_v7  ;;  %v637_v33 = vunpack.c.l.b16 %v497_v22  ;;  %v638_v34 = vunpack.c.l.b16 %v500_v23  ;;  %v407_v35 = vrot.slane %v405_v25, 4 }
  0x42   : > { %v403_v30 = vsel %vm3781_vm10, %v398_v20, %v402_v21  ;;  %v410_v36 = vrot.slane %v408_v26, 5  ;;  %v416_v37 = vrot.slane %v414_v27, 5  ;;  %v420_v38 = vrot.slane %v418_v28, 4 }
  0x43   : > { %v607_v39 = vunpack.c.l.b16 %v393_v29  ;;  %v608_v40 = vunpack.c.l.b16 %v403_v30  ;;  %v646_v42 = vpack.c.b16 %v638_v34, %v637_v33  ;;  %v503_v52 = vrot.slane %v294_v18, 5 }
  0x44   : > { %v411_v44 = vor.u32 %v410_v36, %v407_v35  ;;  %v421_v45 = vor.u32 %v420_v38, %v416_v37  ;;  %v2897_v57 = vrot.slane %v293_v17, 9  ;;  %v429_v1 = vshrl.u32 %v296_v55, 16  ;;  %v299_v38 = vld [vmem:[%s3704_s30 + $0x48] sm:$0xf] }
  0x45   : > { %v616_v47 = vpack.c.b16 %v608_v40, %v607_v39  ;;  %v432_v2 = vshll.u32 %v296_v55, 16  ;;  %v438_v3 = vshll.u32 %v297_v56, 16  ;;  %v442_v4 = vshrl.u32 %v297_v56, 16  ;;  %v300_v39 = vld [vmem:[%s3704_s30 + $0x4c] sm:$0xf] }
  0x46   : > { %v412_v49 = vrot.slane %v411_v44, 4  ;;  %v422_v43 = vrot.slane %v421_v45, 4  ;;  %v504_v5 = vsel %vm3752_vm7, %v2897_v57, %v503_v52  ;;  %v431_v6 = vrot.slane %v429_v1, 4  ;;  %v302_v1 = vld [vmem:[%s3704_s30 + $0x54] sm:$0xf] }
  0x47   : > { %651 = vrot.lane.b32.xlu0 %v644_v62, %s3634_s11  ;;  %621 = vrot.lane.b32.xlu2 %v614_v41, %s3635_s12  ;;  %v295_v41 = vld [vmem:[%s3704_s30 + $0x38] sm:$0x1]  ;;  %v434_v7 = vrot.slane %v432_v2, 5  ;;  %v440_v8 = vrot.slane %v438_v3, 5  ;;  %v444_v9 = vrot.slane %v442_v4, 4  ;;  %v639_v10 = vunpack.c.l.b16 %v504_v5 }
  0x48   : > { %666 = vrot.lane.b32.xlu1 %v3777_v59, %s3632_s9  ;;  %v424_v46 = vshll.u32 %v295_v41, 16  ;;  %v417_v50 = vsel %vm3781_vm10, %v412_v49, %v416_v37  ;;  %v506_v62 = vrot.slane %v295_v41, 5  ;;  %v448_v15 = vshll.u32 %v298_v12, 16  ;;  %v3898_v37 = vld [vmem:[%s3704_s30 + $0x3c] sm:$0xff]  ;;  %v303_v5 = vld [vmem:[%s3704_s30 + $0x58] sm:$0xf] }
  0x49   : > { %v609_v53 = vunpack.c.l.b16 %v417_v50  ;;  %v435_v13 = vor.u32 %v434_v7, %v431_v6  ;;  %v445_v14 = vor.u32 %v444_v9, %v440_v8  ;;  %v510_v17 = vrot.slane %v297_v56, 5  ;;  %v3433_v6 = vld [vmem:[%s3704_s30 + $0x48] sm:$0xff] }
  0x4a   : > { %v426_v48 = vrot.slane %v424_v46, 5  ;;  %v450_v20 = vrot.slane %v448_v15, 5  ;;  %v2898_v21 = vrot.slane %v296_v55, 9  ;;  %v513_v23 = vrot.slane %v298_v12, 5 }
  0x4b   : > { %v436_v18 = vrot.slane %v435_v13, 4  ;;  %v446_v19 = vrot.slane %v445_v14, 4  ;;  %v512_v22 = vrot.slane %v510_v17, 4  ;;  %v516_v40 = vshrl.u32 %v299_v38, 16  ;;  %v3435_v14 = vld [vmem:[%s4639_s1] sm:$0xff] }
  0x4c   : > { %v427_v51 = vsel %vm3781_vm10, %v422_v43, %v426_v48  ;;  %v511_v27 = vsel %vm3752_vm7, %v2898_v21, %v510_v17  ;;  %v519_v41 = vshll.u32 %v299_v38, 16  ;;  %v529_v44 = vshrl.u32 %v300_v39, 16  ;;  %v865_v43 = vld [vmem:[%s4639_s1 + $0x10] sm:$0x3] }
  0x4d   : > { %v610_v54 = vunpack.c.l.b16 %v427_v51  ;;  %v441_v25 = vsel %vm3781_vm10, %v436_v18, %v440_v8  ;;  %v451_v26 = vsel %vm3781_vm10, %v446_v19, %v450_v20  ;;  %v514_v28 = vsel %vm3752_vm7, %v512_v22, %v513_v23  ;;  %v301_v51 = vld [vmem:[%s3704_s30 + $0x50] sm:$0x1] }
  0x4e   : > { %v611_v29 = vunpack.c.l.b16 %v441_v25  ;;  %v612_v30 = vunpack.c.l.b16 %v451_v26  ;;  %v641_v33 = vunpack.c.l.b16 %v511_v27  ;;  %v642_v34 = vunpack.c.l.b16 %v514_v28  ;;  %v304_v25 = vld [vmem:[%s3704_s30 + $0x5c] sm:$0x1] }
  0x4f   : > { %696 = vrot.lane.b32.xlu0 %v3816_v61, %s3638_s16  ;;  %681 = vrot.lane.b32.xlu2 %v615_v58, %s3636_s13  ;;  %v3865_v0 = vpack.c.b16 %v610_v54, %v609_v53  ;;  %v518_v45 = vrot.slane %v516_v40, 4  ;;  %v521_v46 = vrot.slane %v519_v41, 5  ;;  %v531_v49 = vrot.slane %v529_v44, 4 }
  0x50   : > { %711 = vrot.lane.b32.xlu1 %v3836_v24, %s3633_s10  ;;  %v3893_v35 = vpack.c.b16 %v612_v30, %v611_v29  ;;  %v3895_v36 = vpack.c.b16 %v642_v34, %v641_v33  ;;  %v544_v48 = vrot.slane %v300_v39, 5  ;;  %v875_v50 = vunpack.c.l.b16 %v865_v43 }
  0x51   : > { %v535_v54 = vshll.u32 %v301_v51, 16  ;;  %vm894_vm11 = vcmask 1041408   ;;  %v2899_v56 = vrot.slane %v299_v38, 9  ;;  %v550_v8 = vshrl.u32 %v302_v1, 16 }
  0x52   : > { %v878_v55 = vpack.c.b16 %v875_v50, %v875_v50  ;;  %v546_v57 = vrot.slane %v544_v48, 4  ;;  %v553_v9 = vshll.u32 %v302_v1, 16  ;;  %v569_v30 = vshll.u32 %v304_v25, 16  ;;  %v3434_v50 = vld [vmem:[%s3704_s30 + $0x54] sm:$0xff] }
  0x53   : > { %v537_v4 = vrot.slane %v535_v54, 5  ;;  %v552_v18 = vrot.slane %v550_v8, 4  ;;  %v578_v41 = vrot.slane %v303_v5, 5  ;;  %v3427_v54 = vld [vmem:[%s3704_s30] sm:$0xff]  ;;  %vm751_vm12 = vcmask 31744  }
  0x54   : > { %v555_v19 = vrot.slane %v553_v9, 5  ;;  %v571_v38 = vrot.slane %v569_v30, 5  ;;  %vm770_vm13 = vcmask 64512   ;;  %vm783_vm14 = vcmask 97280  }
  0x55   : > { %vm796_vm15 = vcmask 130048   ;;  %vm809_vm0 = vcmask 162816   ;;  %vm822_vm1 = vcmask 195584   ;;  %vm835_vm2 = vcmask 228352  }
  0x56   : > { %v556_v27 = vor.u32 %v555_v19, %v552_v18  ;;  %vm848_vm3 = vcmask 261120   ;;  %vm881_vm4 = vcmask 293888   ;;  %vm1136_vm6 = vcmask 1043456  }
  0x57   : > { %741 = vrot.lane.b32.xlu0 %v646_v42, %s3639_s22  ;;  %726 = vrot.lane.b32.xlu2 %v616_v47, %s3637_s14  ;;  %vm1137_vm8 = vsmask.f32 7938 }
  0x58   : > { %623 = vrot.lane.b32.xlu1 %v615_v58, %s3635_s12  ;;  %v505_v58 = vrot.slane %v503_v52, 4  ;;  %v522_v52 = vor.u32 %v521_v46, %v518_v45  ;;  %v557_v33 = vrot.slane %v556_v27, 4  ;;  %v2900_v46 = vrot.slane %v302_v1, 9  ;;  %vm4038_vm9 = vmand %vm1136_vm6, %vm1137_vm8 }
  0x5a   : > { %v523_v2 = vrot.slane %v522_v52, 4  ;;  %v579_v52 = vsel %vm3752_vm7, %v2900_v46, %v578_v41 }
  0x5f   : > { %668 = vrot.lane.b32.xlu0 %v3836_v24, %s3632_s9  ;;  %653 = vrot.lane.b32.xlu2 %v3816_v61, %s3634_s11  ;;  %v507_v61 = vsel %vm3752_vm7, %v505_v58, %v506_v62  ;;  %v547_v58 = vrot.slane %v301_v51, 5  ;;  %v896_v62 = vsel %vm894_vm11, %v878_v55, 0 }
  0x60   : > { %683 = vrot.lane.b32.xlu1 %v616_v47, %s3636_s13  ;;  %v640_v11 = vunpack.c.l.b16 %v507_v61  ;;  %903 = vmatpush.bf16.msra.mxu0 %v896_v62  ;;  %v3436_v61 = vld [vmem:[%s4639_s1 + $0x8] sm:$0xff] }
  0x61   : > { %v548_v7 = vsel %vm3752_vm7, %v546_v57, %v547_v58 }
  0x62   : > { %v647_v16 = vpack.c.b16 %v640_v11, %v639_v10  ;;  %v559_v10 = vshll.u32 %v303_v5, 16  ;;  %v563_v11 = vshrl.u32 %v303_v5, 16 }
  0x64   : > { %904 = vmatpush.bf16.msra.mxu0 %v3436_v61  ;;  %v561_v22 = vrot.slane %v559_v10, 5  ;;  %v565_v23 = vrot.slane %v563_v11, 4 }
  0x66   : > { %v566_v29 = vor.u32 %v565_v23, %v561_v22  ;;  %v562_v40 = vsel %vm3781_vm10, %v557_v33, %v561_v22 }
  0x67   : > { %713 = vrot.lane.b32.xlu0 %v3863_v63, %s3633_s10  ;;  %698 = vrot.lane.b32.xlu2 %v646_v42, %s3638_s16  ;;  %v721_v44 = vunpack.c.l.b16 %v562_v40 }
  0x68   : > { %728 = vrot.lane.b32.xlu1 %v3865_v0, %s3637_s14  ;;  %905 = vmatpush.bf16.msra.mxu0 %v3435_v14  ;;  %v567_v34 = vrot.slane %v566_v29, 4 }
  0x6f   : > { %625 = vrot.lane.b32.xlu0 %v616_v47, %s3635_s12  ;;  %743 = vrot.lane.b32.xlu2 %v647_v16, %s3639_s22 }
  0x70   : > { %655 = vrot.lane.b32.xlu1 %v646_v42, %s3634_s11  ;;  %v525_v42 = vshll.u32 %v300_v39, 16 }
  0x72   : > { %v527_v47 = vrot.slane %v525_v42, 5  ;;  %v572_v42 = vsel %vm3781_vm10, %v567_v34, %v571_v38 }
  0x73   : > { %v722_v45 = vunpack.c.l.b16 %v572_v42 }
  0x74   : > { %v532_v53 = vor.u32 %v531_v49, %v527_v47  ;;  %v528_v12 = vsel %vm3781_vm10, %v523_v2, %v527_v47  ;;  %v580_v47 = vrot.slane %v578_v41, 4  ;;  %v581_v49 = vrot.slane %v304_v25, 5 }
  0x75   : > { %v676_v20 = vunpack.c.l.b16 %v528_v12  ;;  %v723_v51 = vpack.c.b16 %v722_v45, %v721_v44 }
  0x76   : > { %v533_v3 = vrot.slane %v532_v53, 4  ;;  %v582_v53 = vsel %vm3752_vm7, %v580_v47, %v581_v49 }
  0x77   : > { %685 = vrot.lane.b32.xlu0 %v3865_v0, %s3636_s13  ;;  %670 = vrot.lane.b32.xlu2 %v3863_v63, %s3632_s9  ;;  %v737_v55 = vunpack.c.l.b16 %v582_v53 }
  0x78   : > { %700 = vrot.lane.b32.xlu1 %v647_v16, %s3638_s16  ;;  %v538_v13 = vsel %vm3781_vm10, %v533_v3, %v537_v4 }
  0x79   : > { %v677_v21 = vunpack.c.l.b16 %v538_v13 }
  0x7b   : > { %v678_v28 = vpack.c.b16 %v677_v21, %v676_v20 }
  0x7f   : > { %730 = vrot.lane.b32.xlu0 %v3893_v35, %s3637_s14  ;;  %715 = vrot.lane.b32.xlu2 %v3898_v37, %s3633_s10 }
  0x80   : > { %745 = vrot.lane.b32.xlu1 %v3895_v36, %s3639_s22 }
  0x84   : > { %v3938_v17 = vpop.permute.xlu2 %709 }
  0x87   : > { %657 = vrot.lane.b32.xlu0 %v647_v16, %s3634_s11  ;;  %627 = vrot.lane.b32.xlu2 %v3865_v0, %s3635_s12  ;;  %v545_v0 = vsel %vm3752_vm7, %v2899_v56, %v544_v48  ;;  %v692_v16 = vunpack.c.l.b16 %v548_v7 }
  0x88   : > { %672 = vrot.lane.b32.xlu1 %v3898_v37, %s3632_s9  ;;  %v691_v15 = vunpack.c.l.b16 %v545_v0 }
  0x8a   : > { %v693_v26 = vpack.c.b16 %v692_v16, %v691_v15 }
  0x8f   : > { %702 = vrot.lane.b32.xlu0 %v3895_v36, %s3638_s16  ;;  %687 = vrot.lane.b32.xlu2 %v3893_v35, %s3636_s13 }
  0x90   : > { %717 = vrot.lane.b32.xlu1 %v3433_v6, %s3633_s10 }
  0x97   : > { %747 = vrot.lane.b32.xlu0 %v693_v26, %s3639_s22  ;;  %732 = vrot.lane.b32.xlu2 %v678_v28, %s3637_s14 }
  0x98   : > { %629 = vrot.lane.b32.xlu1 %v3893_v35, %s3635_s12  ;;  %v665_v35 = vpop.permute.xlu1 %664 }
  0x99   : > { %v695_v39 = vpop.permute.xlu2 %694 }
  0x9f   : > { %674 = vrot.lane.b32.xlu0 %v3433_v6, %s3632_s9  ;;  %659 = vrot.lane.b32.xlu2 %v3895_v36, %s3634_s11  ;;  %v736_v36 = vunpack.c.l.b16 %v579_v52 }
  0xa0   : > { %689 = vrot.lane.b32.xlu1 %v678_v28, %s3636_s13 }
  0xa1   : > { %v650_v43 = vpop.permute.xlu0 %649  ;;  %v622_v48 = vpop.permute.xlu2 %621  ;;  %v738_v2 = vpack.c.b16 %v737_v55, %v736_v36 }
  0xa2   : > { %v757_v13 = vsel %vm751_vm12, %v3750_v31, %v622_v48 }
  0xa7   : > { %719 = vrot.lane.b32.xlu0 %v3434_v50, %s3633_s10  ;;  %704 = vrot.lane.b32.xlu2 %v693_v26, %s3638_s16 }
  0xa8   : > { %734 = vrot.lane.b32.xlu1 %v723_v51, %s3637_s14 }
  0xa9   : > { %v620_v56 = vpop.permute.xlu0 %619  ;;  %v682_v57 = vpop.permute.xlu2 %681 }
  0xaa   : > { %v754_v58 = vsel %vm751_vm12, %v3427_v54, %v620_v56  ;;  %v680_v62 = vpop.permute.xlu1 %679 }
  0xab   : > { %v772_v1 = vsel %vm770_vm13, %v754_v58, %v650_v43 }
  0xac   : > { %v785_v3 = vsel %vm783_vm14, %v772_v1, %v665_v35 }
  0xad   : > { %v798_v4 = vsel %vm796_vm15, %v785_v3, %v680_v62 }
  0xae   : > { %v811_v5 = vsel %vm809_vm0, %v798_v4, %v695_v39 }
  0xaf   : > { %749 = vrot.lane.b32.xlu2 %v738_v2, %s3639_s22  ;;  %v824_v61 = vsel %vm822_vm1, %v811_v5, %v3938_v17 }
  0xb1   : > { %v725_v6 = vpop.permute.xlu0 %724  ;;  %v727_v0 = vpop.permute.xlu2 %726 }
  0xb2   : > { %v837_v7 = vsel %vm835_vm2, %v824_v61, %v725_v6  ;;  %v740_v8 = vpop.permute.xlu1 %739 }
  0xb3   : > { %v850_v9 = vsel %vm848_vm3, %v837_v7, %v740_v8 }
  0xb4   : > { %2941 = vmatmul.msk.bf16.vlgmr.msra.gmra.mxu0 %vm881_vm4, %v850_v9 }
  0xb9   : > { %v652_v10 = vpop.permute.xlu0 %651  ;;  %v654_v11 = vpop.permute.xlu2 %653 }
  0xba   : > { %v667_v12 = vpop.permute.xlu1 %666  ;;  %v774_v14 = vsel %vm770_vm13, %v757_v13, %v652_v10 }
  0xbb   : > { %v787_v15 = vsel %vm783_vm14, %v774_v14, %v667_v12 }
  0xbc   : > { %v800_v18 = vsel %vm796_vm15, %v787_v15, %v682_v57 }
  0xc1   : > { %v697_v16 = vpop.permute.xlu0 %696  ;;  %v699_v17 = vpop.permute.xlu2 %698 }
  0xc2   : > { %v712_v19 = vpop.permute.xlu1 %711  ;;  %v813_v20 = vsel %vm809_vm0, %v800_v18, %v697_v16 }
  0xc3   : > { %v826_v21 = vsel %vm822_vm1, %v813_v20, %v712_v19 }
  0xc4   : > { %v839_v22 = vsel %vm835_vm2, %v826_v21, %v727_v0 }
  0xc9   : > { %v742_v23 = vpop.permute.xlu0 %741  ;;  %v744_v25 = vpop.permute.xlu2 %743 }
  0xca   : > { %v624_v26 = vpop.permute.xlu1 %623  ;;  %v852_v31 = vsel %vm848_vm3, %v839_v22, %v742_v23 }
  0xcb   : > { %2942 = vmatmul.msk.bf16.gmra.mxu0 %vm881_vm4, %v852_v31  ;;  %v760_v27 = vsel %vm751_vm12, %v3777_v59, %v624_v26  ;;  %v4027_v26 = vld [vmem:[%s4641_s3] ss:$0 sm:$0xff]  ;;  %v4032_v31 = vld [vmem:[%s4641_s3 + $0x1] ss:$0 sm:$0xff] }
  0xcc   : > { %v776_v29 = vsel %vm770_vm13, %v760_v27, %v654_v11 }
  0xd1   : > { %v669_v28 = vpop.permute.xlu0 %668  ;;  %v671_v34 = vpop.permute.xlu2 %670 }
  0xd2   : > { %v684_v30 = vpop.permute.xlu1 %683  ;;  %v789_v33 = vsel %vm783_vm14, %v776_v29, %v669_v28 }
  0xd3   : > { %v802_v38 = vsel %vm796_vm15, %v789_v33, %v684_v30 }
  0xd4   : > { %v815_v39 = vsel %vm809_vm0, %v802_v38, %v699_v17 }
  0xd9   : > { %v714_v40 = vpop.permute.xlu0 %713  ;;  %v716_v59 = vpop.permute.xlu2 %715 }
  0xda   : > { %v828_v41 = vsel %vm822_vm1, %v815_v39, %v714_v40  ;;  %v729_v42 = vpop.permute.xlu1 %728 }
  0xdb   : > { %v841_v44 = vsel %vm835_vm2, %v828_v41, %v729_v42 }
  0xdc   : > { %v854_v35 = vsel %vm848_vm3, %v841_v44, %v744_v25 }
  0xdd   : > { %2943 = vmatmul.msk.bf16.gmra.mxu0 %vm881_vm4, %v854_v35 }
  0xe1   : > { %v626_v45 = vpop.permute.xlu0 %625  ;;  %v628_v43 = vpop.permute.xlu2 %627 }
  0xe2   : > { %v656_v46 = vpop.permute.xlu1 %655  ;;  %v763_v47 = vsel %vm751_vm12, %v3836_v24, %v626_v45  ;;  %v766_v1 = vsel %vm751_vm12, %v3863_v63, %v628_v43 }
  0xe3   : > { %v778_v49 = vsel %vm770_vm13, %v763_v47, %v656_v46 }
  0xe4   : > { %v791_v50 = vsel %vm783_vm14, %v778_v49, %v671_v34 }
  0xe9   : > { %v686_v48 = vpop.permute.xlu0 %685  ;;  %v688_v55 = vpop.permute.xlu2 %687 }
  0xea   : > { %v701_v51 = vpop.permute.xlu1 %700  ;;  %v804_v52 = vsel %vm796_vm15, %v791_v50, %v686_v48 }
  0xeb   : > { %v817_v53 = vsel %vm809_vm0, %v804_v52, %v701_v51 }
  0xec   : > { %v830_v54 = vsel %vm822_vm1, %v817_v53, %v716_v59  ;;  %v1139_v59 = vld [vmem:[#allocation2] sm:$0xf] }
  0xf1   : > { %v731_v36 = vpop.permute.xlu0 %730  ;;  %v733_v2 = vpop.permute.xlu2 %732 }
  0xf2   : > { %v843_v56 = vsel %vm835_vm2, %v830_v54, %v731_v36  ;;  %v746_v57 = vpop.permute.xlu1 %745  ;;  %v1145_v54 = vld [vmem:[#allocation2 + $0x8] sm:$0x1] }
  0xf3   : > { %v856_v24 = vsel %vm848_vm3, %v843_v56, %v746_v57 }
  0xf4   : > { %2944 = vmatmul.msk.bf16.gmra.mxu0 %vm881_vm4, %v856_v24 }
  0xf9   : > { %v658_v58 = vpop.permute.xlu0 %657  ;;  %v660_v7 = vpop.permute.xlu2 %659 }
  0xfa   : > { %v673_v62 = vpop.permute.xlu1 %672  ;;  %v780_v3 = vsel %vm770_vm13, %v766_v1, %v658_v58 }
  0xfb   : > { %v793_v4 = vsel %vm783_vm14, %v780_v3, %v673_v62 }
  0xfc   : > { %v806_v61 = vsel %vm796_vm15, %v793_v4, %v688_v55 }
 0x101   : > { %v703_v5 = vpop.permute.xlu0 %702  ;;  %v705_v13 = vpop.permute.xlu2 %704 }
 0x102   : > { %v718_v6 = vpop.permute.xlu1 %717  ;;  %v819_v0 = vsel %vm809_vm0, %v806_v61, %v703_v5 }
 0x103   : > { %v832_v8 = vsel %vm822_vm1, %v819_v0, %v718_v6 }
 0x104   : > { %v845_v9 = vsel %vm835_vm2, %v832_v8, %v733_v2 }
 0x109   : > { %v748_v10 = vpop.permute.xlu0 %747  ;;  %v750_v21 = vpop.permute.xlu2 %749 }
 0x10a   : > { %v630_v11 = vpop.permute.xlu1 %629  ;;  %v858_v63 = vsel %vm848_vm3, %v845_v9, %v748_v10  ;;  %v1148_v9 = vld [vmem:[#allocation2 + $0xc] sm:$0xf] }
 0x10b   : > { %2945 = vmatmul.msk.bf16.gmra.mxu0 %vm881_vm4, %v858_v63  ;;  %v769_v12 = vsel %vm751_vm12, %v3898_v37, %v630_v11  ;;  %vm1013_vm12 = vsmask.f32 256 }
 0x10c   : > { %v782_v15 = vsel %vm770_vm13, %v769_v12, %v660_v7  ;;  %vm1014_vm13 = vsmask.f32 4368 }
 0x111   : > { %v675_v14 = vpop.permute.xlu0 %674 }
 0x112   : > { %v690_v16 = vpop.permute.xlu1 %689  ;;  %v795_v17 = vsel %vm783_vm14, %v782_v15, %v675_v14  ;;  %vm1143_vm14 = vcmask 1040384  }
 0x113   : > { %v808_v18 = vsel %vm796_vm15, %v795_v17, %v690_v16  ;;  %vm4044_vm15 = vmor %vm1013_vm12, %vm1014_vm13 }
 0x114   : > { %v821_v19 = vsel %vm809_vm0, %v808_v18, %v705_v13  ;;  %vm4048_vm0 = vmand %vm1143_vm14, %vm1013_vm12 }
 0x119   : > { %v720_v20 = vpop.permute.xlu0 %719 }
 0x11a   : > { %v834_v22 = vsel %vm822_vm1, %v821_v19, %v720_v20  ;;  %v735_v23 = vpop.permute.xlu1 %734  ;;  %v1152_v19 = vld [vmem:[#allocation2 + $0x14] sm:$0x1] }
 0x11b   : > { %v847_v25 = vsel %vm835_vm2, %v834_v22, %v735_v23 }
 0x11c   : > { %v860_v37 = vsel %vm848_vm3, %v847_v25, %v750_v21 }
 0x11d   : > { %2946 = vmatmul.msk.bf16.gmra.mxu0 %vm881_vm4, %v860_v37 }
 0x131   : > { %v907_v27 = vpop.f32.mrf.mxu0 }
 0x132   : > { %v939_v28 = vmul.f32 %v4027_v26, %v907_v27 }
 0x134   : > { %v953_v29 = vadd.f32 %v4032_v31, %v939_v28 }
 0x136   : > { %vm965_vm5 = vcmp.gt.f32.partialorder %v953_v29, 0.0  ;;  %v977_v30 = vmul.f32 0.01, %v953_v29 }
 0x138   : > { %v989_v33 = vsel %vm965_vm5, %v953_v29, %v977_v30 }
 0x139   : > { %v1001_v34 = vpack.c.bf16 %v989_v33, %v989_v33  ;;  %v909_v38 = vpop.f32.mrf.mxu0 }
 0x13a   : > { %v940_v39 = vmul.f32 %v4027_v26, %v909_v38 }
 0x13b   : > { %v1017_v40 = vshrl.u32 %v1001_v34, 16  ;;  %v1020_v44 = vshll.u32 %v1001_v34, 16 }
 0x13c   : > { %v954_v41 = vadd.f32 %v4032_v31, %v940_v39 }
 0x13d   : > { %v1019_v42 = vrot.slane %v1017_v40, 7 }
 0x13e   : > { %vm966_vm11 = vcmp.gt.f32.partialorder %v954_v41, 0.0  ;;  %v978_v45 = vmul.f32 0.01, %v954_v41 }
 0x13f   : > { %v1022_v46 = vor.u32 %v1020_v44, %v1019_v42  ;;  %v1023_v36 = vrot.slane %v1019_v42, 4 }
 0x140   : > { %v990_v47 = vsel %vm966_vm11, %v954_v41, %v978_v45  ;;  %v1155_v41 = vld [vmem:[#allocation2 + $0x18] sm:$0xf] }
 0x141   : > { %v1140_v49 = vsel %vm4038_vm9, %v1022_v46, %v1139_v59  ;;  %v1002_v43 = vpack.c.bf16 %v990_v47, %v990_v47 }
 0x142   : > { %1141 = vst [vmem:[#allocation2] sm:$0xf] %v1140_v49 }
 0x143   : > { %v1025_v48 = vshrl.u32 %v1002_v43, 16  ;;  %v1028_v52 = vshll.u32 %v1002_v43, 16 }
 0x145   : > { %v1027_v51 = vrot.slane %v1025_v48, 7  ;;  %v1159_v48 = vld [vmem:[#allocation2 + $0x20] sm:$0x1] }
 0x147   : > { %v1030_v55 = vor.u32 %v1028_v52, %v1027_v51  ;;  %v1032_v56 = vrot.slane %v1027_v51, 4 }
 0x148   : > { %v912_v57 = vpop.f32.mrf.mxu0 }
 0x149   : > { %v1031_v24 = vsel %vm4044_vm15, %v1023_v36, %v1030_v55  ;;  %v1146_v58 = vsel %vm4048_vm0, %v1032_v56, %v1145_v54  ;;  %v941_v62 = vmul.f32 %v4027_v26, %v912_v57 }
 0x14a   : > { %1142 = vst [vmem:[#allocation2 + $0x4] sm:$0xf] %v1031_v24 }
 0x14b   : > { %1147 = vst [vmem:[#allocation2 + $0x8] sm:$0x1] %v1146_v58  ;;  %v955_v1 = vadd.f32 %v4032_v31, %v941_v62 }
 0x14d   : > { %vm967_vm1 = vcmp.gt.f32.partialorder %v955_v1, 0.0  ;;  %v979_v2 = vmul.f32 0.01, %v955_v1 }
 0x14f   : > { %v991_v3 = vsel %vm967_vm1, %v955_v1, %v979_v2 }
 0x150   : > { %v1003_v4 = vpack.c.bf16 %v991_v3, %v991_v3  ;;  %v914_v5 = vpop.f32.mrf.mxu0 }
 0x151   : > { %v942_v61 = vmul.f32 %v4027_v26, %v914_v5 }
 0x152   : > { %v1034_v6 = vshrl.u32 %v1003_v4, 16  ;;  %v1037_v8 = vshll.u32 %v1003_v4, 16 }
 0x153   : > { %v956_v0 = vadd.f32 %v4032_v31, %v942_v61 }
 0x154   : > { %v1036_v7 = vrot.slane %v1034_v6, 7 }
 0x155   : > { %vm968_vm2 = vcmp.gt.f32.partialorder %v956_v0, 0.0  ;;  %v980_v10 = vmul.f32 0.01, %v956_v0 }
 0x156   : > { %v1039_v11 = vor.u32 %v1037_v8, %v1036_v7  ;;  %v1040_v21 = vrot.slane %v1036_v7, 4 }
 0x157   : > { %v992_v63 = vsel %vm968_vm2, %v956_v0, %v980_v10  ;;  %v1162_v0 = vld [vmem:[#allocation2 + $0x24] sm:$0xf] }
 0x158   : > { %v1149_v12 = vsel %vm4038_vm9, %v1039_v11, %v1148_v9  ;;  %v1004_v13 = vpack.c.bf16 %v992_v63, %v992_v63 }
 0x159   : > { %1150 = vst [vmem:[#allocation2 + $0xc] sm:$0xf] %v1149_v12 }
 0x15a   : > { %v1042_v14 = vshrl.u32 %v1004_v13, 16  ;;  %v917_v15 = vpop.f32.mrf.mxu0  ;;  %v1045_v18 = vshll.u32 %v1004_v13, 16 }
 0x15b   : > { %v943_v16 = vmul.f32 %v4027_v26, %v917_v15 }
 0x15c   : > { %v1044_v17 = vrot.slane %v1042_v14, 7  ;;  %v1166_v14 = vld [vmem:[#allocation2 + $0x2c] sm:$0x1] }
 0x15d   : > { %v957_v20 = vadd.f32 %v4032_v31, %v943_v16 }
 0x15e   : > { %v1047_v22 = vor.u32 %v1045_v18, %v1044_v17  ;;  %v1049_v23 = vrot.slane %v1044_v17, 4 }
 0x15f   : > { %vm969_vm3 = vcmp.gt.f32.partialorder %v957_v20, 0.0  ;;  %v981_v25 = vmul.f32 0.01, %v957_v20 }
 0x160   : > { %v1048_v37 = vsel %vm4044_vm15, %v1040_v21, %v1047_v22  ;;  %v1153_v27 = vsel %vm4048_vm0, %v1049_v23, %v1152_v19 }
 0x161   : > { %1151 = vst [vmem:[#allocation2 + $0x10] sm:$0xf] %v1048_v37  ;;  %v993_v28 = vsel %vm969_vm3, %v957_v20, %v981_v25 }
 0x162   : > { %1154 = vst [vmem:[#allocation2 + $0x14] sm:$0x1] %v1153_v27  ;;  %v1005_v29 = vpack.c.bf16 %v993_v28, %v993_v28  ;;  %v919_v30 = vpop.f32.mrf.mxu0 }
 0x163   : > { %v944_v33 = vmul.f32 %v4027_v26, %v919_v30 }
 0x164   : > { %v1051_v34 = vshrl.u32 %v1005_v29, 16  ;;  %v1054_v40 = vshll.u32 %v1005_v29, 16 }
 0x165   : > { %v958_v38 = vadd.f32 %v4032_v31, %v944_v33 }
 0x166   : > { %v1053_v39 = vrot.slane %v1051_v34, 7 }
 0x167   : > { %vm970_vm4 = vcmp.gt.f32.partialorder %v958_v38, 0.0  ;;  %v982_v42 = vmul.f32 0.01, %v958_v38 }
 0x168   : > { %v1056_v44 = vor.u32 %v1054_v40, %v1053_v39  ;;  %v1057_v51 = vrot.slane %v1053_v39, 4 }
 0x169   : > { %v994_v59 = vsel %vm970_vm4, %v958_v38, %v982_v42  ;;  %v1169_v38 = vld [vmem:[#allocation2 + $0x30] sm:$0xf] }
 0x16a   : > { %v1156_v45 = vsel %vm4038_vm9, %v1056_v44, %v1155_v41  ;;  %v1006_v46 = vpack.c.bf16 %v994_v59, %v994_v59 }
 0x16b   : > { %1157 = vst [vmem:[#allocation2 + $0x18] sm:$0xf] %v1156_v45 }
 0x16c   : > { %v1059_v47 = vshrl.u32 %v1006_v46, 16  ;;  %v1062_v43 = vshll.u32 %v1006_v46, 16 }
 0x16e   : > { %v1061_v49 = vrot.slane %v1059_v47, 7 }
 0x170   : > { %v1064_v52 = vor.u32 %v1062_v43, %v1061_v49  ;;  %v1066_v54 = vrot.slane %v1061_v49, 4  ;;  %v1173_v43 = vld [vmem:[#allocation2 + $0x38] sm:$0x1] }
 0x171   : > { %v922_v36 = vpop.f32.mrf.mxu0 }
 0x172   : > { %v1065_v55 = vsel %vm4044_vm15, %v1057_v51, %v1064_v52  ;;  %v1160_v56 = vsel %vm4048_vm0, %v1066_v54, %v1159_v48  ;;  %v945_v57 = vmul.f32 %v4027_v26, %v922_v36 }
 0x173   : > { %1158 = vst [vmem:[#allocation2 + $0x1c] sm:$0xf] %v1065_v55 }
 0x174   : > { %1161 = vst [vmem:[#allocation2 + $0x20] sm:$0x1] %v1160_v56  ;;  %v959_v24 = vadd.f32 %v4032_v31, %v945_v57 }
 0x176   : > { %vm971_vm5 = vcmp.gt.f32.partialorder %v959_v24, 0.0  ;;  %v983_v58 = vmul.f32 0.01, %v959_v24 }
 0x178   : > { %v995_v62 = vsel %vm971_vm5, %v959_v24, %v983_v58 }
 0x179   : > { %v1007_v1 = vpack.c.bf16 %v995_v62, %v995_v62  ;;  %v924_v2 = vpop.f32.mrf.mxu0 }
 0x17a   : > { %v946_v3 = vmul.f32 %v4027_v26, %v924_v2 }
 0x17b   : > { %v1068_v4 = vshrl.u32 %v1007_v1, 16  ;;  %v1071_v6 = vshll.u32 %v1007_v1, 16 }
 0x17c   : > { %v960_v5 = vadd.f32 %v4032_v31, %v946_v3 }
 0x17d   : > { %v1070_v61 = vrot.slane %v1068_v4, 7 }
 0x17e   : > { %vm972_vm6 = vcmp.gt.f32.partialorder %v960_v5, 0.0  ;;  %v984_v7 = vmul.f32 0.01, %v960_v5 }
 0x17f   : > { %v1073_v8 = vor.u32 %v1071_v6, %v1070_v61  ;;  %v1074_v15 = vrot.slane %v1070_v61, 4 }
 0x180   : > { %v996_v9 = vsel %vm972_vm6, %v960_v5, %v984_v7  ;;  %v1176_v5 = vld [vmem:[#allocation2 + $0x3c] sm:$0xf] }
 0x181   : > { %v1163_v10 = vsel %vm4038_vm9, %v1073_v8, %v1162_v0  ;;  %v1008_v11 = vpack.c.bf16 %v996_v9, %v996_v9 }
 0x182   : > { %1164 = vst [vmem:[#allocation2 + $0x24] sm:$0xf] %v1163_v10 }
 0x183   : > { %v1076_v63 = vshrl.u32 %v1008_v11, 16  ;;  %v1079_v13 = vshll.u32 %v1008_v11, 16 }
 0x185   : > { %v1078_v12 = vrot.slane %v1076_v63, 7  ;;  %v1180_v63 = vld [vmem:[#allocation2 + $0x44] sm:$0x1] }
 0x187   : > { %v1081_v16 = vor.u32 %v1079_v13, %v1078_v12  ;;  %v1083_v17 = vrot.slane %v1078_v12, 4 }
 0x188   : > { %v927_v18 = vpop.f32.mrf.mxu0 }
 0x189   : > { %v1082_v19 = vsel %vm4044_vm15, %v1074_v15, %v1081_v16  ;;  %v1167_v20 = vsel %vm4048_vm0, %v1083_v17, %v1166_v14  ;;  %v947_v21 = vmul.f32 %v4027_v26, %v927_v18 }
 0x18a   : > { %1165 = vst [vmem:[#allocation2 + $0x28] sm:$0xf] %v1082_v19 }
 0x18b   : > { %1168 = vst [vmem:[#allocation2 + $0x2c] sm:$0x1] %v1167_v20  ;;  %v961_v22 = vadd.f32 %v4032_v31, %v947_v21 }
 0x18d   : > { %vm973_vm8 = vcmp.gt.f32.partialorder %v961_v22, 0.0  ;;  %v985_v23 = vmul.f32 0.01, %v961_v22 }
 0x18f   : > { %v997_v25 = vsel %vm973_vm8, %v961_v22, %v985_v23 }
 0x190   : > { %v1009_v37 = vpack.c.bf16 %v997_v25, %v997_v25  ;;  %v929_v27 = vpop.f32.mrf.mxu0 }
 0x191   : > { %v948_v28 = vmul.f32 %v4027_v26, %v929_v27 }
 0x192   : > { %v1085_v29 = vshrl.u32 %v1009_v37, 16  ;;  %v1088_v34 = vshll.u32 %v1009_v37, 16 }
 0x193   : > { %v962_v30 = vadd.f32 %v4032_v31, %v948_v28 }
 0x194   : > { %v1087_v33 = vrot.slane %v1085_v29, 7 }
 0x195   : > { %vm974_vm11 = vcmp.gt.f32.partialorder %v962_v30, 0.0  ;;  %v986_v39 = vmul.f32 0.01, %v962_v30 }
 0x196   : > { %v1090_v40 = vor.u32 %v1088_v34, %v1087_v33  ;;  %v1091_v51 = vrot.slane %v1087_v33, 4 }
 0x197   : > { %v998_v41 = vsel %vm974_vm11, %v962_v30, %v986_v39 }
 0x198   : > { %v1170_v42 = vsel %vm4038_vm9, %v1090_v40, %v1169_v38  ;;  %v1010_v44 = vpack.c.bf16 %v998_v41, %v998_v41 }
 0x199   : > { %1171 = vst [vmem:[#allocation2 + $0x30] sm:$0xf] %v1170_v42 }
 0x19a   : > { %v1093_v59 = vshrl.u32 %v1010_v44, 16  ;;  %v932_v45 = vpop.f32.mrf.mxu0  ;;  %v1096_v49 = vshll.u32 %v1010_v44, 16 }
 0x19b   : > { %v949_v46 = vmul.f32 %v4027_v26, %v932_v45 }
 0x19c   : > { %v1095_v47 = vrot.slane %v1093_v59, 7 }
 0x19d   : > { %v963_v48 = vadd.f32 %v4032_v31, %v949_v46 }
 0x19e   : > { %v1098_v52 = vor.u32 %v1096_v49, %v1095_v47  ;;  %v1100_v54 = vrot.slane %v1095_v47, 4 }
 0x19f   : > { %vm975_vm12 = vcmp.gt.f32.partialorder %v963_v48, 0.0  ;;  %v987_v36 = vmul.f32 0.01, %v963_v48 }
 0x1a0   : > { %v1099_v55 = vsel %vm4044_vm15, %v1091_v51, %v1098_v52  ;;  %v1174_v56 = vsel %vm4048_vm0, %v1100_v54, %v1173_v43 }
 0x1a1   : > { %1172 = vst [vmem:[#allocation2 + $0x34] sm:$0xf] %v1099_v55  ;;  %v999_v57 = vsel %vm975_vm12, %v963_v48, %v987_v36 }
 0x1a2   : > { %1175 = vst [vmem:[#allocation2 + $0x38] sm:$0x1] %v1174_v56  ;;  %v1011_v24 = vpack.c.bf16 %v999_v57, %v999_v57  ;;  %v934_v58 = vpop.f32.mrf.mxu0 }
 0x1a3   : > { %v950_v62 = vmul.f32 %v4027_v26, %v934_v58 }
 0x1a4   : > { %v1102_v1 = vshrl.u32 %v1011_v24, 16  ;;  %v1105_v4 = vshll.u32 %v1011_v24, 16 }
 0x1a5   : > { %v964_v2 = vadd.f32 %v4032_v31, %v950_v62 }
 0x1a6   : > { %v1104_v3 = vrot.slane %v1102_v1, 7 }
 0x1a7   : > { %vm976_vm13 = vcmp.gt.f32.partialorder %v964_v2, 0.0  ;;  %v988_v61 = vmul.f32 0.01, %v964_v2 }
 0x1a8   : > { %v1107_v6 = vor.u32 %v1105_v4, %v1104_v3  ;;  %v1108_v26 = vrot.slane %v1104_v3, 4 }
 0x1a9   : > { %v1000_v0 = vsel %vm976_vm13, %v964_v2, %v988_v61 }
 0x1aa   : > { %v1177_v7 = vsel %vm4038_vm9, %v1107_v6, %v1176_v5  ;;  %v1012_v8 = vpack.c.bf16 %v1000_v0, %v1000_v0 }
 0x1ab   : > { %1178 = vst [vmem:[#allocation2 + $0x3c] sm:$0xf] %v1177_v7 }
 0x1ac   : > { %v1110_v9 = vshrl.u32 %v1012_v8, 16  ;;  %v1113_v11 = vshll.u32 %v1012_v8, 16 }
 0x1ae   : > { %v1112_v10 = vrot.slane %v1110_v9, 7 }
 0x1b0   : > { %v1115_v12 = vor.u32 %v1113_v11, %v1112_v10  ;;  %v1117_v13 = vrot.slane %v1112_v10, 4  ;;  %1185 = sbr.rel (%p2892_p8) target bundleno = 441 (0x1b9), region = 44 }
 0x1b2   : > { %v1116_v31 = vsel %vm4044_vm15, %v1108_v26, %v1115_v12  ;;  %v1181_v14 = vsel %vm4048_vm0, %v1117_v13, %v1180_v63 }
 0x1b3   : > { %1179 = vst [vmem:[#allocation2 + $0x40] sm:$0xf] %v1116_v31 }
 0x1b4   : > { %1182 = vst [vmem:[#allocation2 + $0x44] sm:$0x1] %v1181_v14 }
 0x1b5   : > { %v1186_v15 = vld [vmem:[#allocation2] sm:$0xf]  ;;  %v1190_v16 = vld [vmem:[#allocation2 + $0x8] sm:$0x1]  ;;  %v3640_v18 = vmov 0  }
 0x1b6   : > { %v1187_v17 = vsel %vm4038_vm9, 0, %v1186_v15  ;;  %1189 = vst [vmem:[#allocation2 + $0x4] sm:$0xf] %v3640_v18  ;;  %v1191_v19 = vsel %vm4048_vm0, 0, %v1190_v16 }
 0x1b7   : > { %1188 = vst [vmem:[#allocation2] sm:$0xf] %v1187_v17 }
 0x1b8   : > { %1192 = vst [vmem:[#allocation2 + $0x8] sm:$0x1] %v1191_v19 }
 0x1b9 PF: > { %p2948_p9 = scmp.ne.s32.totalorder %s3614_s15, 3 }
 0x1bb   : > { %1196 = sbr.rel (%p2948_p9) target bundleno = 452 (0x1c4), region = 48 }
 0x1c0   : > { %v1198_v50 = vld [vmem:[#allocation2 + $0x3c] sm:$0xf]  ;;  %v1202_v20 = vld [vmem:[#allocation2 + $0x44] sm:$0x1]  ;;  %v3641_v22 = vmov 0  }
 0x1c1   : > { %v1199_v21 = vsel %vm4038_vm9, 0, %v1198_v50  ;;  %1201 = vst [vmem:[#allocation2 + $0x40] sm:$0xf] %v3641_v22  ;;  %v1203_v23 = vsel %vm4048_vm0, 0, %v1202_v20 }
 0x1c2   : > { %1200 = vst [vmem:[#allocation2 + $0x3c] sm:$0xf] %v1199_v21 }
 0x1c3   : > { %1204 = vst [vmem:[#allocation2 + $0x44] sm:$0x1] %v1203_v23 }
 0x1c4 PF: > { %v3456_v25 = vld [vmem:[%s4640_s2 + $0x78] sm:$0xff]  ;;  %v3455_v35 = vld [vmem:[%s4640_s2 + $0x70] sm:$0xff]  ;;  %v3454_v29 = vld [vmem:[%s4640_s2 + $0x68] sm:$0xff] }
 0x1c5   : > { %v3448_v37 = vld [vmem:[%s4640_s2 + $0x38] sm:$0xff]  ;;  %3521 = vmatpush.bf16.msra.mxu3 %v3456_v25  ;;  %v3447_v53 = vld [vmem:[%s4640_s2 + $0x30] sm:$0xff]  ;;  %1410 = vmatpush.bf16.msra.mxu1 %v3456_v25  ;;  %v3446_v30 = vld [vmem:[%s4640_s2 + $0x28] sm:$0xff] }
 0x1c6   : > { %3529 = vmatpush.bf16.msra.mxu2 %v3448_v37  ;;  %1511 = vmatpush.bf16.msrb.mxu0 %v3448_v37  ;;  %v1209_v27 = vld [vmem:[#allocation2 + $0x18] sm:$0xf]  ;;  %v4129_v28 = vld [vmem:[#allocation2 + $0x1c] sm:$0xf]  ;;  %v4139_v40 = vld [vmem:[#allocation2 + $0x20] sm:$0x1] }
 0x1c7   : > { %v1282_v33 = vshrl.u32 %v1209_v27, 16  ;;  %v1285_v34 = vshll.u32 %v1209_v27, 16  ;;  %v1291_v38 = vshll.u32 %v4129_v28, 16  ;;  %v1295_v39 = vshrl.u32 %v4129_v28, 16  ;;  %v1205_v45 = vld [vmem:[#allocation2] sm:$0xf] }
 0x1c8   : > { %v4143_v46 = vld [vmem:[#allocation2 + $0x4] sm:$0xf]  ;;  %v1234_v47 = vshrl.u32 %v1205_v45, 16  ;;  %v1237_v48 = vshll.u32 %v1205_v45, 16  ;;  %v1301_v52 = vshll.u32 %v4139_v40, 16  ;;  %v3452_v1 = vld [vmem:[%s4640_s2 + $0x58] sm:$0xff] }
 0x1c9   : > { %3522 = vmatpush.bf16.msra.mxu3 %v3455_v35  ;;  %1411 = vmatpush.bf16.msra.mxu1 %v3455_v35  ;;  %v1284_v41 = vrot.slane %v1282_v33, 4  ;;  %v1287_v42 = vrot.slane %v1285_v34, 5  ;;  %v4141_v44 = vrot.slane %v1291_v38, 5  ;;  %v1297_v59 = vrot.slane %v1295_v39, 4  ;;  %v3453_v49 = vld [vmem:[%s4640_s2 + $0x60] sm:$0xff]  ;;  %v3444_v2 = vld [vmem:[%s4640_s2 + $0x18] sm:$0xff] }
 0x1ca   : > { %3530 = vmatpush.bf16.msra.mxu2 %v3447_v53  ;;  %1512 = vmatpush.bf16.msrb.mxu0 %v3447_v53  ;;  %v3445_v43 = vld [vmem:[%s4640_s2 + $0x20] sm:$0xff]  ;;  %v1243_v51 = vshll.u32 %v4143_v46, 16  ;;  %v1236_v54 = vrot.slane %v1234_v47, 4  ;;  %v1247_v36 = vshrl.u32 %v4143_v46, 16  ;;  %v4155_v57 = vld [vmem:[#allocation2 + $0x8] sm:$0x1] }
 0x1cb   : > { %v1288_v55 = vor.u32 %v1287_v42, %v1284_v41  ;;  %v1298_v56 = vor.u32 %v1297_v59, %v4141_v44  ;;  %v1239_v24 = vrot.slane %v1237_v48, 5  ;;  %v1253_v5 = vshll.u32 %v4155_v57, 16  ;;  %v3451_v7 = vld [vmem:[%s4640_s2 + $0x50] sm:$0xff]  ;;  %v1211_v9 = vld [vmem:[#allocation2 + $0x24] sm:$0xf]  ;;  %v3450_v19 = vld [vmem:[%s4640_s2 + $0x48] sm:$0xff] }
 0x1cc   : > { %v1245_v58 = vrot.slane %v1243_v51, 5  ;;  %v1249_v62 = vrot.slane %v1247_v36, 4  ;;  %v1303_v0 = vrot.slane %v1301_v52, 5  ;;  %v3443_v8 = vld [vmem:[%s4640_s2 + $0x10] sm:$0xff]  ;;  %v4170_v10 = vld [vmem:[#allocation2 + $0x28] sm:$0xf] }
 0x1cd   : > { %3523 = vmatpush.bf16.msra.mxu3 %v3454_v29  ;;  %1412 = vmatpush.bf16.msra.mxu1 %v3454_v29  ;;  %v1240_v3 = vor.u32 %v1239_v24, %v1236_v54  ;;  %v1289_v61 = vrot.slane %v1288_v55, 4  ;;  %v1299_v6 = vrot.slane %v1298_v56, 4  ;;  %v1255_v26 = vrot.slane %v1253_v5, 5  ;;  %v1207_v12 = vld [vmem:[#allocation2 + $0xc] sm:$0xf]  ;;  %v3449_v34 = vld [vmem:[%s4640_s2 + $0x40] sm:$0xff] }
 0x1ce   : > { %3531 = vmatpush.bf16.msra.mxu2 %v3446_v30  ;;  %1513 = vmatpush.bf16.msrb.mxu0 %v3446_v30  ;;  %v1250_v4 = vor.u32 %v1249_v62, %v1245_v58  ;;  %v4177_v14 = vld [vmem:[#allocation2 + $0x10] sm:$0xf]  ;;  %v1306_v15 = vshrl.u32 %v1211_v9, 16  ;;  %v1309_v16 = vshll.u32 %v1211_v9, 16  ;;  %v1315_v17 = vshll.u32 %v4170_v10, 16  ;;  %v3442_v50 = vld [vmem:[%s4640_s2 + $0x8] sm:$0xff] }
 0x1cf   : > { %v1241_v11 = vrot.slane %v1240_v3, 4  ;;  %v1294_v13 = vsel %vm3781_vm10, %v1289_v61, %v4141_v44  ;;  %v1304_v31 = vsel %vm3781_vm10, %v1299_v6, %v1303_v0  ;;  %v1319_v18 = vshrl.u32 %v4170_v10, 16  ;;  %v3441_v38 = vld [vmem:[%s4640_s2] sm:$0xff]  ;;  %v4201_v42 = vld [vmem:[#allocation2 + $0x2c] sm:$0x1]  ;;  %v3439_v52 = vld [vmem:[#allocation2 + $0x18] sm:$0xff] }
 0x1d0   : > { %v1251_v63 = vrot.slane %v1250_v4, 4  ;;  %v1258_v20 = vshrl.u32 %v1207_v12, 16  ;;  %v1261_v21 = vshll.u32 %v1207_v12, 16  ;;  %v1267_v25 = vshll.u32 %v4177_v14, 16  ;;  %v4209_v48 = vld [vmem:[#allocation2 + $0x14] sm:$0x1] }
 0x1d1   : > { %3524 = vmatpush.bf16.msra.mxu3 %v3453_v49  ;;  %1413 = vmatpush.bf16.msra.mxu1 %v3453_v49  ;;  %v1246_v22 = vsel %vm3781_vm10, %v1241_v11, %v1245_v58  ;;  %v1271_v37 = vshrl.u32 %v4177_v14, 16  ;;  %v1350_v35 = vunpack.c.l.b16 %v1294_v13  ;;  %v1351_v53 = vunpack.c.l.b16 %v1304_v31  ;;  %v3464_v49 = vld [vmem:[%s4640_s2 + $0xb8] sm:$0xff]  ;;  %v3437_v24 = vld [vmem:[#allocation2] sm:$0xff]  ;;  %v3463_v3 = vld [vmem:[%s4640_s2 + $0xb0] sm:$0xff] }
 0x1d2   : > { %3532 = vmatpush.bf16.msra.mxu2 %v3445_v43  ;;  %1514 = vmatpush.bf16.msrb.mxu0 %v3445_v43  ;;  %v1256_v23 = vsel %vm3781_vm10, %v1251_v63, %v1255_v26  ;;  %v1308_v27 = vrot.slane %v1306_v15, 4  ;;  %v1311_v29 = vrot.slane %v1309_v16, 5  ;;  %v4193_v30 = vrot.slane %v1315_v17, 5  ;;  %v3484_v43 = vld [vmem:[%s4640_s2 + $0x138] sm:$0xff]  ;;  %v3483_v4 = vld [vmem:[%s4640_s2 + $0x130] sm:$0xff]  ;;  %v3462_v26 = vld [vmem:[%s4640_s2 + $0xa8] sm:$0xff] }
 0x1d3   : > { %v1321_v33 = vrot.slane %v1319_v18, 4  ;;  %v1346_v39 = vunpack.c.l.b16 %v1246_v22  ;;  %v1347_v41 = vunpack.c.l.b16 %v1256_v23  ;;  %v1260_v44 = vrot.slane %v1258_v20, 4  ;;  %v3476_v62 = vld [vmem:[%s4640_s2 + $0xf8] sm:$0xff]  ;;  %v4226_v63 = vld [vmem:[#allocation2 + $0x10] sm:$0xf]  ;;  %v3482_v12 = vld [vmem:[%s4640_s2 + $0x128] sm:$0xff] }
 0x1d4   : > { %v1263_v59 = vrot.slane %v1261_v21, 5  ;;  %v1269_v45 = vrot.slane %v1267_v25, 5  ;;  %v1273_v47 = vrot.slane %v1271_v37, 4  ;;  %v1356_v51 = vpack.c.b16 %v1351_v53, %v1350_v35  ;;  %v3461_v21 = vld [vmem:[%s4640_s2 + $0xa0] sm:$0xff] }
 0x1d5   : > { %3525 = vmatpush.bf16.msra.mxu3 %v3452_v1  ;;  %1414 = vmatpush.bf16.msra.mxu1 %v3452_v1  ;;  %v1312_v54 = vor.u32 %v1311_v29, %v1308_v27  ;;  %v1322_v36 = vor.u32 %v1321_v33, %v4193_v30  ;;  %v1325_v55 = vshll.u32 %v4201_v42, 16  ;;  %v1354_v56 = vpack.c.b16 %v1347_v41, %v1346_v39  ;;  %v3481_v22 = vld [vmem:[%s4640_s2 + $0x120] sm:$0xff]  ;;  %v4254_v27 = vld [vmem:[#allocation2 + $0x14] sm:$0x1]  ;;  %v3480_v39 = vld [vmem:[%s4640_s2 + $0x118] sm:$0xff] }
 0x1d6   : > { %3533 = vmatpush.bf16.msra.mxu2 %v3444_v2  ;;  %1515 = vmatpush.bf16.msrb.mxu0 %v3444_v2  ;;  %v1264_v58 = vor.u32 %v1263_v59, %v1260_v44  ;;  %v1274_v1 = vor.u32 %v1273_v47, %v1269_v45  ;;  %v1277_v2 = vshll.u32 %v4209_v48, 16  ;;  %v1855_v18 = vshll.u32 %v4226_v63, 16  ;;  %v1540_v41 = vld [vmem:[#allocation2] sm:$0xe]  ;;  %v3440_v59 = vld [vmem:[#allocation2 + $0x24] sm:$0xff] }
 0x1d7   : > { %v1313_v5 = vrot.slane %v1312_v54, 4  ;;  %v1323_v61 = vrot.slane %v1322_v36, 4  ;;  %v1327_v6 = vrot.slane %v1325_v55, 5  ;;  %v1865_v47 = vshll.u32 %v4254_v27, 16  ;;  %v3472_v54 = vld [vmem:[%s4640_s2 + $0xd8] sm:$0xff]  ;;  %v3459_v55 = vld [vmem:[%s4640_s2 + $0x90] sm:$0xff] }
 0x1d8   : > { %v1265_v0 = vrot.slane %v1264_v58, 4  ;;  %v1275_v9 = vrot.slane %v1274_v1, 4  ;;  %v1279_v11 = vrot.slane %v1277_v2, 5  ;;  %v3045_v36 = vrot.slane %v1540_v41, 9  ;;  %v4280_v1 = vld [vmem:[#allocation2 + $0x1c] sm:$0xf] }
 0x1d9   : > { %3526 = vmatpush.bf16.msra.mxu3 %v3451_v7  ;;  %1415 = vmatpush.bf16.msra.mxu1 %v3451_v7  ;;  %v1833_v7 = vld [vmem:[#allocation2 + $0xc] sm:$0xf]  ;;  %v1318_v13 = vsel %vm3781_vm10, %v1313_v5, %v4193_v30  ;;  %v1328_v31 = vsel %vm3781_vm10, %v1323_v61, %v1327_v6  ;;  %v4256_v30 = vrot.slane %v1855_v18, 5  ;;  %v1557_v58 = vrot.slane %v4155_v57, 5  ;;  %v3471_v61 = vld [vmem:[%s4640_s2 + $0xd0] sm:$0xff] }
 0x1da   : > { %3534 = vmatpush.bf16.msra.mxu2 %v3443_v8  ;;  %1516 = vmatpush.bf16.msrb.mxu0 %v3443_v8  ;;  %v3475_v8 = vld [vmem:[%s4640_s2 + $0xf0] sm:$0xff]  ;;  %v1846_v15 = vshrl.u32 %v1833_v7, 16  ;;  %v1270_v16 = vsel %vm3781_vm10, %v1265_v0, %v1269_v45  ;;  %v1849_v17 = vshll.u32 %v1833_v7, 16  ;;  %v1280_v20 = vsel %vm3781_vm10, %v1275_v9, %v1279_v11  ;;  %v1542_v7 = vld [vmem:[#allocation2 + $0x18] sm:$0xe] }
 0x1db   : > { %v1352_v23 = vunpack.c.l.b16 %v1318_v13  ;;  %v1353_v25 = vunpack.c.l.b16 %v1328_v31  ;;  %v1348_v37 = vunpack.c.l.b16 %v1270_v16  ;;  %v1349_v53 = vunpack.c.l.b16 %v1280_v20  ;;  %v3457_v20 = vld [vmem:[%s4640_s2 + $0x80] sm:$0xff] }
 0x1dc   : > { %v1848_v35 = vrot.slane %v1846_v15, 4  ;;  %v1851_v29 = vrot.slane %v1849_v17, 5  ;;  %v1554_v45 = vrot.slane %v4143_v46, 5  ;;  %v3479_v46 = vld [vmem:[%s4640_s2 + $0x110] sm:$0xff]  ;;  %v1571_v5 = vrot.slane %v4139_v40, 5  ;;  %v3470_v17 = vld [vmem:[%s4640_s2 + $0xc8] sm:$0xff] }
 0x1dd   : > { %3527 = vmatpush.bf16.msra.mxu3 %v3450_v19  ;;  %1416 = vmatpush.bf16.msra.mxu1 %v3450_v19  ;;  %v1859_v19 = vshrl.u32 %v4226_v63, 16  ;;  %v1357_v44 = vpack.c.b16 %v1353_v25, %v1352_v23  ;;  %v1879_v40 = vshll.u32 %v4280_v1, 16  ;;  %v1883_v9 = vshrl.u32 %v4280_v1, 16 }
 0x1de   : > { %3535 = vmatpush.bf16.msra.mxu2 %v3442_v50  ;;  %1517 = vmatpush.bf16.msrb.mxu0 %v3442_v50  ;;  %v3474_v50 = vld [vmem:[%s4640_s2 + $0xe8] sm:$0xff]  ;;  %v1555_v6 = vsel %vm3752_vm7, %v3045_v36, %v1554_v45  ;;  %v3047_v11 = vrot.slane %v1542_v7, 9  ;;  %v1561_v41 = vrot.slane %v4177_v14, 5  ;;  %v3491_v14 = vld [vmem:[%s4640_s2 + $0x170] sm:$0xff] }
 0x1df   : > { %v1861_v33 = vrot.slane %v1859_v19, 4  ;;  %v1597_v18 = vunpack.c.l.b16 %v1555_v6  ;;  %v4317_v25 = vrot.slane %v1879_v40, 5  ;;  %v3503_v7 = vld [vmem:[%s4640_s2 + $0x1b0] sm:$0xff]  ;;  %v1543_v40 = vld [vmem:[#allocation2 + $0x24] sm:$0xe] }
 0x1e1   : > { %3528 = vmatpush.bf16.msra.mxu3 %v3449_v34  ;;  %1417 = vmatpush.bf16.msra.mxu1 %v3449_v34  ;;  %v3473_v34 = vld [vmem:[%s4640_s2 + $0xe0] sm:$0xff] }
 0x1e2   : > { %3536 = vmatpush.bf16.msra.mxu2 %v3441_v38  ;;  %1518 = vmatpush.bf16.msrb.mxu0 %v3441_v38  ;;  %v3460_v38 = vld [vmem:[%s4640_s2 + $0x98] sm:$0xff] }
 0x1e4   : > { %1428 = vmatmul.bf16.vlgmr.msra.gmra.mxu3 %v1356_v51  ;;  %1418 = vmatmul.bf16.vlgmr.msra.gmra.mxu1 %v1354_v56  ;;  %v1852_v51 = vor.u32 %v1851_v29, %v1848_v35  ;;  %v1836_v56 = vld [vmem:[#allocation2 + $0x18] sm:$0xf] }
 0x1e5   : > { %1661 = vmatpush.bf16.msrb.mxu3 %v3464_v49  ;;  %1529 = vmatmul.bf16.vlgmr.msra.gmra.mxu2 %v3439_v52  ;;  %v1355_v49 = vpack.c.b16 %v1349_v53, %v1348_v37  ;;  %v1862_v52 = vor.u32 %v1861_v33, %v4256_v30  ;;  %v1870_v57 = vshrl.u32 %v1836_v56, 16  ;;  %v1873_v0 = vshll.u32 %v1836_v56, 16  ;;  %v3520_v33 = vld [vmem:[%s4640_s2 + $0x238] sm:$0xff] }
 0x1e6   : > { %2022 = vmatpush.bf16.msrb.mxu2 %v3484_v43  ;;  %1519 = vmatmul.bf16.vlgmr.msrb.gmra.mxu0 %v3437_v24  ;;  %v3438_v43 = vld [vmem:[#allocation2 + $0xc] sm:$0xff]  ;;  %v1556_v24 = vrot.slane %v1554_v45, 4  ;;  %v1853_v2 = vrot.slane %v1852_v51, 4  ;;  %v1885_v37 = vrot.slane %v1883_v9, 4 }
 0x1e7   : > { %1796 = vmatpush.bf16.msrb.mxu1 %v3476_v62  ;;  %v1867_v62 = vrot.slane %v1865_v47, 5  ;;  %v1875_v23 = vrot.slane %v1873_v0, 5  ;;  %v3518_v0 = vld [vmem:[%s4640_s2 + $0x228] sm:$0xff] }
 0x1e8   : > { %v1858_v13 = vsel %vm3781_vm10, %v1853_v2, %v4256_v30  ;;  %v3492_v30 = vld [vmem:[%s4640_s2 + $0x178] sm:$0xff]  ;;  %v1886_v47 = vor.u32 %v1885_v37, %v4317_v25 }
 0x1e9   : > { %1662 = vmatpush.bf16.msrb.mxu3 %v3463_v3  ;;  %v1863_v3 = vrot.slane %v1862_v52, 4  ;;  %v1958_v53 = vunpack.c.l.b16 %v1858_v13  ;;  %v3465_v52 = vld [vmem:[#allocation2 + $0xc] sm:$0xff]  ;;  %v3504_v2 = vld [vmem:[%s4640_s2 + $0x1b8] sm:$0xff]  ;;  %v3048_v13 = vrot.slane %v1543_v40, 9 }
 0x1ea   : > { %2023 = vmatpush.bf16.msrb.mxu2 %v3483_v4  ;;  %v1568_v4 = vrot.slane %v4129_v28, 5  ;;  %v3478_v28 = vld [vmem:[%s4640_s2 + $0x108] sm:$0xff]  ;;  %2319 = vmatpush.bf16.msra.mxu0 %v3504_v2  ;;  %v3507_v2 = vld [vmem:[%s4640_s2 + $0x1d0] sm:$0xff] }
 0x1eb   : > { %1797 = vmatpush.bf16.msrb.mxu1 %v3475_v8  ;;  %v3458_v8 = vld [vmem:[%s4640_s2 + $0x88] sm:$0xff]  ;;  %v1868_v31 = vsel %vm3781_vm10, %v1863_v3, %v1867_v62  ;;  %v3511_v62 = vld [vmem:[%s4640_s2 + $0x1f0] sm:$0xff]  ;;  %v1839_v3 = vld [vmem:[#allocation2 + $0x24] sm:$0xf] }
 0x1ec   : > { %v1569_v15 = vsel %vm3752_vm7, %v3047_v11, %v1568_v4  ;;  %v1959_v29 = vunpack.c.l.b16 %v1868_v31  ;;  %v1897_v11 = vshll.u32 %v1839_v3, 16  ;;  %v3489_v31 = vld [vmem:[%s4640_s2 + $0x160] sm:$0xff] }
 0x1ed   : > { %1663 = vmatpush.bf16.msrb.mxu3 %v3462_v26  ;;  %v1570_v26 = vrot.slane %v1568_v4, 4  ;;  %v1601_v19 = vunpack.c.l.b16 %v1569_v15  ;;  %v4354_v4 = vld [vmem:[#allocation2 + $0x28] sm:$0xf] }
 0x1ee   : > { %2024 = vmatpush.bf16.msrb.mxu2 %v3482_v12  ;;  %v1558_v12 = vsel %vm3752_vm7, %v1556_v24, %v1557_v58  ;;  %v1966_v51 = vpack.c.b16 %v1959_v29, %v1958_v53  ;;  %v1887_v24 = vrot.slane %v1886_v47, 4  ;;  %2320 = vmatpush.bf16.msra.mxu0 %v3503_v7 }
 0x1ef   : > { %1798 = vmatpush.bf16.msrb.mxu1 %v3474_v50  ;;  %v1572_v16 = vsel %vm3752_vm7, %v1570_v26, %v1571_v5  ;;  %v1598_v35 = vunpack.c.l.b16 %v1558_v12  ;;  %v1575_v5 = vrot.slane %v4170_v10, 5  ;;  %v1903_v26 = vshll.u32 %v4354_v4, 16 }
 0x1f0   : > { %v1602_v50 = vunpack.c.l.b16 %v1572_v16  ;;  %v1907_v12 = vshrl.u32 %v4354_v4, 16 }
 0x1f1   : > { %1664 = vmatpush.bf16.msrb.mxu3 %v3461_v21  ;;  %v3477_v21 = vld [vmem:[%s4640_s2 + $0x100] sm:$0xff]  ;;  %v1577_v9 = vrot.slane %v1575_v5, 4  ;;  %v1905_v53 = vrot.slane %v1903_v26, 5 }
 0x1f2   : > { %2025 = vmatpush.bf16.msrb.mxu2 %v3481_v22  ;;  %v1872_v22 = vrot.slane %v1870_v57, 4  ;;  %v1909_v29 = vrot.slane %v1907_v12, 4  ;;  %v3513_v26 = vld [vmem:[%s4640_s2 + $0x200] sm:$0xff] }
 0x1f3   : > { %1799 = vmatpush.bf16.msrb.mxu1 %v3473_v34  ;;  %v4325_v34 = vld [vmem:[#allocation2 + $0x20] sm:$0x1] }
 0x1f4   : > { %1433 = vmatmul.bf16.gmra.mxu3 %v1357_v44  ;;  %1423 = vmatmul.bf16.gmra.mxu1 %v1355_v49  ;;  %v3512_v44 = vld [vmem:[%s4640_s2 + $0x1f8] sm:$0xff]  ;;  %v1876_v45 = vor.u32 %v1875_v23, %v1872_v22  ;;  %v1889_v49 = vshll.u32 %v4325_v34, 16  ;;  %v3509_v23 = vld [vmem:[%s4640_s2 + $0x1e0] sm:$0xff] }
 0x1f5   : > { %1665 = vmatpush.bf16.msrb.mxu3 %v3460_v38  ;;  %1534 = vmatmul.bf16.gmra.mxu2 %v3440_v59  ;;  %v4327_v38 = vpack.c.b16 %v1602_v50, %v1601_v19  ;;  %v1541_v59 = vld [vmem:[#allocation2 + $0xc] sm:$0xe]  ;;  %v1576_v19 = vsel %vm3752_vm7, %v3048_v13, %v1575_v5 }
 0x1f6   : > { %2026 = vmatpush.bf16.msrb.mxu2 %v3480_v39  ;;  %1524 = vmatmul.bf16.gmra.mxu0 %v3438_v43  ;;  %v3469_v39 = vld [vmem:[%s4640_s2 + $0xc0] sm:$0xff]  ;;  %v1605_v43 = vpack.c.b16 %v1598_v35, %v1597_v18  ;;  %v3046_v36 = vrot.slane %v1541_v59, 9  ;;  %v1877_v56 = vrot.slane %v1876_v45, 4  ;;  %v1891_v58 = vrot.slane %v1889_v49, 5  ;;  %v3502_v18 = vld [vmem:[%s4640_s2 + $0x1a8] sm:$0xff]  ;;  %v3508_v45 = vld [vmem:[%s4640_s2 + $0x1d8] sm:$0xff] }
 0x1f7   : > { %1800 = vmatpush.bf16.msrb.mxu1 %v3472_v54  ;;  %v3519_v54 = vld [vmem:[%s4640_s2 + $0x230] sm:$0xff]  ;;  %v1899_v35 = vrot.slane %v1897_v11, 5  ;;  %2321 = vmatpush.bf16.msra.mxu0 %v3502_v18  ;;  %v3514_v5 = vld [vmem:[%s4640_s2 + $0x208] sm:$0xff] }
 0x1f8   : > { %v1562_v6 = vsel %vm3752_vm7, %v3046_v36, %v1561_v41  ;;  %v1882_v10 = vsel %vm3781_vm10, %v1877_v56, %v4317_v25  ;;  %v1603_v25 = vunpack.c.l.b16 %v1576_v19  ;;  %v3500_v36 = vld [vmem:[%s4640_s2 + $0x198] sm:$0xff]  ;;  %v3498_v11 = vld [vmem:[%s4640_s2 + $0x188] sm:$0xff] }
 0x1f9   : > { %1666 = vmatpush.bf16.msrb.mxu3 %v3459_v55  ;;  %v1563_v55 = vrot.slane %v1561_v41, 4  ;;  %v1599_v16 = vunpack.c.l.b16 %v1562_v6  ;;  %v3516_v41 = vld [vmem:[%s4640_s2 + $0x218] sm:$0xff] }
 0x1fa   : > { %2027 = vmatpush.bf16.msrb.mxu2 %v3479_v46  ;;  %v1564_v46 = vrot.slane %v4209_v48, 5  ;;  %v3490_v48 = vld [vmem:[%s4640_s2 + $0x168] sm:$0xff] }
 0x1fb   : > { %1801 = vmatpush.bf16.msrb.mxu1 %v3471_v61  ;;  %v1578_v61 = vrot.slane %v4201_v42, 5  ;;  %v1892_v42 = vsel %vm3781_vm10, %v1887_v24, %v1891_v58  ;;  %v2080_v24 = vrot.slane %v4254_v27, 5  ;;  %v1842_v58 = vld [vmem:[#allocation2 + $0x30] sm:$0xf] }
 0x1fc   : > { %v1565_v57 = vsel %vm3752_vm7, %v1563_v55, %v1564_v46  ;;  %v1961_v22 = vunpack.c.l.b16 %v1892_v42  ;;  %v3499_v27 = vld [vmem:[%s4640_s2 + $0x190] sm:$0xff]  ;;  %v1921_v7 = vshll.u32 %v1842_v58, 16 }
 0x1fd   : > { %1667 = vmatpush.bf16.msrb.mxu3 %v3458_v8  ;;  %v3510_v8 = vld [vmem:[%s4640_s2 + $0x1e8] sm:$0xff]  ;;  %v1579_v15 = vsel %vm3752_vm7, %v1577_v9, %v1578_v61 }
 0x1fe   : > { %2028 = vmatpush.bf16.msrb.mxu2 %v3478_v28  ;;  %v1894_v28 = vshrl.u32 %v1839_v3, 16  ;;  %v1604_v50 = vunpack.c.l.b16 %v1579_v15  ;;  %v2077_v3 = vrot.slane %v4226_v63, 5  ;;  %v3506_v61 = vld [vmem:[%s4640_s2 + $0x1c8] sm:$0xff]  ;;  %v1923_v18 = vrot.slane %v1921_v7, 5  ;;  %v2582_v7 = vld [vmem:[#allocation2 + $0x18] sm:$0xe] }
 0x1ff   : > { %1802 = vmatpush.bf16.msrb.mxu1 %v3470_v17  ;;  %v3517_v17 = vld [vmem:[%s4640_s2 + $0x220] sm:$0xff] }
 0x200   : > { %v1896_v37 = vrot.slane %v1894_v28, 4  ;;  %v2079_v6 = vrot.slane %v2077_v3, 4  ;;  %v3485_v28 = vld [vmem:[%s4640_s2 + $0x140] sm:$0xff] }
 0x201   : > { %1668 = vmatpush.bf16.msrb.mxu3 %v3457_v20  ;;  %v1600_v20 = vunpack.c.l.b16 %v1565_v57 }
 0x202   : > { %2029 = vmatpush.bf16.msrb.mxu2 %v3477_v21  ;;  %v1960_v21 = vunpack.c.l.b16 %v1882_v10  ;;  %v1900_v49 = vor.u32 %v1899_v35, %v1896_v37  ;;  %v2059_v10 = vld [vmem:[#allocation2 + $0xc] sm:$0xe]  ;;  %v2081_v9 = vsel %vm3752_vm7, %v2079_v6, %v2080_v24  ;;  %v3467_v35 = vld [vmem:[#allocation2 + $0x24] sm:$0xff] }
 0x203   : > { %1803 = vmatpush.bf16.msrb.mxu1 %v3469_v39  ;;  %v4399_v39 = vpack.c.b16 %v1604_v50, %v1603_v25  ;;  %v1606_v59 = vpack.c.b16 %v1600_v20, %v1599_v16  ;;  %v3209_v40 = vrot.slane %v2059_v10, 9  ;;  %v2121_v12 = vunpack.c.l.b16 %v2081_v9  ;;  %v3468_v10 = vld [vmem:[#allocation2 + $0x30] sm:$0xff] }
 0x204   : > { %1669 = vmatmul.bf16.vlgmr.msrb.gmra.mxu3 %v1605_v43  ;;  %v1967_v47 = vpack.c.b16 %v1961_v22, %v1960_v21  ;;  %v1910_v43 = vor.u32 %v1909_v29, %v1905_v53  ;;  %v1901_v55 = vrot.slane %v1900_v49, 4  ;;  %v4461_v21 = vld [vmem:[#allocation2 + $0x38] sm:$0x1]  ;;  %v3497_v22 = vld [vmem:[%s4640_s2 + $0x180] sm:$0xff]  ;;  %v2087_v49 = vrot.slane %v4325_v34, 5 }
 0x205   : > { %2184 = vmatpush.bf16.msra.mxu3 %v3492_v30  ;;  %2030 = vmatmul.bf16.vlgmr.msrb.gmra.mxu2 %v1966_v51  ;;  %v4394_v30 = vld [vmem:[#allocation2 + $0x2c] sm:$0x1]  ;;  %v2078_v15 = vsel %vm3752_vm7, %v3209_v40, %v2077_v3  ;;  %v1937_v29 = vshll.u32 %v4461_v21, 16  ;;  %v3494_v40 = vld [vmem:[#allocation2 + $0x24] sm:$0xff]  ;;  %v3373_v9 = vrot.slane %v2582_v7, 9 }
 0x206   : > { %2707 = vmatpush.bf16.msra.mxu2 %v3520_v33  ;;  %1804 = vmatmul.bf16.vlgmr.msrb.gmra.mxu1 %v3465_v52  ;;  %v3488_v33 = vld [vmem:[%s4640_s2 + $0x158] sm:$0xff]  ;;  %v1913_v51 = vshll.u32 %v4394_v30, 16  ;;  %v1911_v46 = vrot.slane %v1910_v43, 4  ;;  %v1906_v63 = vsel %vm3781_vm10, %v1901_v55, %v1905_v53  ;;  %v2120_v19 = vunpack.c.l.b16 %v2078_v15 }
 0x207   : > { %2545 = vmatpush.bf16.msra.mxu1 %v3512_v44  ;;  %v3501_v44 = vld [vmem:[%s4640_s2 + $0x1a0] sm:$0xff]  ;;  %v3466_v52 = vld [vmem:[#allocation2 + $0x18] sm:$0xff]  ;;  %v1962_v13 = vunpack.c.l.b16 %v1906_v63 }
 0x208   : > { %2322 = vmatpush.bf16.msra.mxu0 %v3501_v44  ;;  %v1915_v56 = vrot.slane %v1913_v51, 5  ;;  %v2356_v43 = vld [vmem:[#allocation2 + $0x18] sm:$0xf]  ;;  %v2358_v63 = vld [vmem:[#allocation2 + $0x20] sm:$0x1] }
 0x209   : > { %2185 = vmatpush.bf16.msra.mxu3 %v3491_v14  ;;  %v3487_v14 = vld [vmem:[%s4640_s2 + $0x150] sm:$0xff]  ;;  %v2369_v55 = vshrl.u32 %v2356_v43, 16 }
 0x20a   : > { %2708 = vmatpush.bf16.msra.mxu2 %v3519_v54  ;;  %v3515_v54 = vld [vmem:[%s4640_s2 + $0x210] sm:$0xff]  ;;  %v1916_v57 = vsel %vm3781_vm10, %v1911_v46, %v1915_v56  ;;  %v2372_v56 = vshll.u32 %v2356_v43, 16  ;;  %v2583_v43 = vld [vmem:[#allocation2 + $0x24] sm:$0xe] }
 0x20b   : > { %2546 = vmatpush.bf16.msra.mxu1 %v3511_v62  ;;  %v3486_v62 = vld [vmem:[%s4640_s2 + $0x148] sm:$0xff]  ;;  %v1963_v16 = vunpack.c.l.b16 %v1916_v57 }
 0x20c   : > { %2323 = vmatpush.bf16.msra.mxu0 %v3500_v36 }
 0x20d   : > { %2186 = vmatpush.bf16.msra.mxu3 %v3490_v48  ;;  %v4428_v48 = vld [vmem:[#allocation2 + $0x34] sm:$0xf]  ;;  %v1968_v25 = vpack.c.b16 %v1963_v16, %v1962_v13  ;;  %v2359_v13 = vld [vmem:[#allocation2 + $0x24] sm:$0xf] }
 0x20e   : > { %2709 = vmatpush.bf16.msra.mxu2 %v3518_v0  ;;  %v1918_v0 = vshrl.u32 %v1842_v58, 16  ;;  %v1927_v42 = vshll.u32 %v4428_v48, 16 }
 0x20f   : > { %2547 = vmatpush.bf16.msra.mxu1 %v3510_v8  ;;  %v1931_v8 = vshrl.u32 %v4428_v48, 16 }
 0x210   : > { %2324 = vmatpush.bf16.msra.mxu0 %v3499_v27  ;;  %v1929_v50 = vrot.slane %v1927_v42, 5  ;;  %v2371_v27 = vrot.slane %v2369_v55, 4 }
 0x211   : > { %2187 = vmatpush.bf16.msra.mxu3 %v3489_v31  ;;  %v3505_v31 = vld [vmem:[%s4640_s2 + $0x1c0] sm:$0xff]  ;;  %v1933_v20 = vrot.slane %v1931_v8, 4 }
 0x212   : > { %2710 = vmatpush.bf16.msra.mxu2 %v3517_v17  ;;  %v1920_v17 = vrot.slane %v1918_v0, 4 }
 0x213   : > { %2548 = vmatpush.bf16.msra.mxu1 %v3509_v23  ;;  %v4466_v23 = vpack.c.b16 %v2121_v12, %v2120_v19  ;;  %v1934_v53 = vor.u32 %v1933_v20, %v1929_v50  ;;  %v2360_v12 = vld [vmem:[#allocation2 + $0x28] sm:$0xf]  ;;  %v2393_v19 = vshrl.u32 %v2359_v13, 16 }
 0x214   : > { %1674 = vmatmul.bf16.gmra.mxu3 %v1606_v59  ;;  %2325 = vmatpush.bf16.msra.mxu0 %v3498_v11  ;;  %v1924_v37 = vor.u32 %v1923_v18, %v1920_v17  ;;  %v1939_v59 = vrot.slane %v1937_v29, 5  ;;  %v2402_v20 = vshll.u32 %v2360_v12, 16 }
 0x215   : > { %2188 = vmatpush.bf16.msra.mxu3 %v3488_v33  ;;  %2035 = vmatmul.bf16.gmra.mxu2 %v1967_v47  ;;  %v3493_v33 = vld [vmem:[#allocation2 + $0x18] sm:$0xff]  ;;  %v1935_v44 = vrot.slane %v1934_v53, 4  ;;  %v2084_v47 = vrot.slane %v4280_v1, 5  ;;  %v2395_v53 = vrot.slane %v2393_v19, 4 }
 0x216   : > { %2711 = vmatpush.bf16.msra.mxu2 %v3516_v41  ;;  %1809 = vmatmul.bf16.gmra.mxu1 %v3466_v52  ;;  %v1925_v41 = vrot.slane %v1924_v37, 4  ;;  %v2357_v52 = vld [vmem:[#allocation2 + $0x1c] sm:$0xf] }
 0x217   : > { %2549 = vmatpush.bf16.msra.mxu1 %v3508_v45  ;;  %v2060_v45 = vld [vmem:[#allocation2 + $0x18] sm:$0xe]  ;;  %v1940_v36 = vsel %vm3781_vm10, %v1935_v44, %v1939_v59  ;;  %v2378_v34 = vshll.u32 %v2357_v52, 16  ;;  %v2382_v24 = vshrl.u32 %v2357_v52, 16  ;;  %v2600_v57 = vrot.slane %v2357_v52, 5  ;;  %v3496_v19 = vld [vmem:[#allocation2 + $0x3c] sm:$0xff] }
 0x218   : > { %2326 = vmatpush.bf16.msra.mxu0 %v3497_v22  ;;  %v3210_v51 = vrot.slane %v2060_v45, 9  ;;  %v2406_v22 = vshrl.u32 %v2360_v12, 16  ;;  %v2361_v45 = vld [vmem:[#allocation2 + $0x2c] sm:$0x1] }
 0x219   : > { %2189 = vmatpush.bf16.msra.mxu3 %v3487_v14  ;;  %v2086_v14 = vrot.slane %v2084_v47, 4  ;;  %v2384_v6 = vrot.slane %v2382_v24, 4  ;;  %v2602_v11 = vrot.slane %v2600_v57, 4  ;;  %v2601_v17 = vsel %vm3752_vm7, %v3373_v9, %v2600_v57  ;;  %v2363_v24 = vld [vmem:[#allocation2 + $0x34] sm:$0xf] }
 0x21a   : > { %2712 = vmatpush.bf16.msra.mxu2 %v3515_v54  ;;  %v1930_v54 = vsel %vm3781_vm10, %v1925_v41, %v1929_v50  ;;  %v2396_v50 = vshll.u32 %v2359_v13, 16  ;;  %v2643_v37 = vunpack.c.l.b16 %v2601_v17  ;;  %v2408_v41 = vrot.slane %v2406_v22, 4  ;;  %v2364_v9 = vld [vmem:[#allocation2 + $0x38] sm:$0x1] }
 0x21b   : > { %2550 = vmatpush.bf16.msra.mxu1 %v3507_v2  ;;  %2327 = vmatmul.bf16.vlgmr.msra.gmra.mxu0 %v3493_v33  ;;  %v2088_v46 = vsel %vm3752_vm7, %v2086_v14, %v2087_v49  ;;  %v1965_v2 = vunpack.c.l.b16 %v1940_v36  ;;  %v2404_v33 = vrot.slane %v2402_v20, 5  ;;  %v2412_v14 = vshll.u32 %v2361_v45, 16 }
 0x21c   : > { %v2123_v58 = vunpack.c.l.b16 %v2088_v46  ;;  %v2398_v29 = vrot.slane %v2396_v50, 5  ;;  %v3374_v36 = vrot.slane %v2583_v43, 9  ;;  %v2610_v46 = vrot.slane %v2361_v45, 5 }
 0x21d   : > { %2190 = vmatpush.bf16.msra.mxu3 %v3486_v62  ;;  %v1964_v62 = vunpack.c.l.b16 %v1930_v54  ;;  %v2409_v52 = vor.u32 %v2408_v41, %v2404_v33  ;;  %v2614_v13 = vrot.slane %v2363_v24, 5  ;;  %v2094_v22 = vrot.slane %v4394_v30, 5 }
 0x21e   : > { %2713 = vmatpush.bf16.msra.mxu2 %v3514_v5  ;;  %v2374_v5 = vrot.slane %v2372_v56, 5 }
 0x21f   : > { %2551 = vmatpush.bf16.msra.mxu1 %v3506_v61  ;;  %v2380_v61 = vrot.slane %v2378_v34, 5  ;;  %v1969_v0 = vpack.c.b16 %v1965_v2, %v1964_v62  ;;  %v2410_v56 = vrot.slane %v2409_v52, 4  ;;  %v2414_v34 = vrot.slane %v2412_v14, 5 }
 0x220   : > { %v2375_v42 = vor.u32 %v2374_v5, %v2371_v27 }
 0x221   : > { %2191 = vmatpush.bf16.msra.mxu3 %v3485_v28  ;;  %v2385_v8 = vor.u32 %v2384_v6, %v2380_v61  ;;  %v2388_v28 = vshll.u32 %v2358_v63, 16  ;;  %v2426_v6 = vshll.u32 %v2363_v24, 16 }
 0x222   : > { %2714 = vmatpush.bf16.msra.mxu2 %v3513_v26  ;;  %v2603_v26 = vrot.slane %v2358_v63, 5  ;;  %v2430_v63 = vshrl.u32 %v2363_v24, 16  ;;  %v2367_v24 = vld [vmem:[#allocation2 + $0x44] sm:$0x1] }
 0x223   : > { %2552 = vmatpush.bf16.msra.mxu1 %v3505_v31  ;;  %v2376_v31 = vrot.slane %v2375_v42, 4  ;;  %v2386_v15 = vrot.slane %v2385_v8, 4  ;;  %v2390_v16 = vrot.slane %v2388_v28, 5  ;;  %v2428_v28 = vrot.slane %v2426_v6, 5  ;;  %v2585_v6 = vld [vmem:[#allocation2 + $0x3c] sm:$0xe] }
 0x224   : > { %1679 = vmatmul.bf16.gmra.mxu3 %v4327_v38  ;;  %v2085_v38 = vsel %vm3752_vm7, %v3210_v51, %v2084_v47  ;;  %v2604_v18 = vsel %vm3752_vm7, %v2602_v11, %v2603_v26  ;;  %v2607_v47 = vrot.slane %v2360_v12, 5  ;;  %v2399_v51 = vor.u32 %v2398_v29, %v2395_v53  ;;  %v2061_v26 = vld [vmem:[#allocation2 + $0x24] sm:$0xe]  ;;  %v2366_v29 = vld [vmem:[#allocation2 + $0x40] sm:$0xf] }
 0x225   : > { %2040 = vmatmul.bf16.gmra.mxu2 %v1968_v25  ;;  %v2122_v1 = vunpack.c.l.b16 %v2085_v38  ;;  %v2391_v25 = vsel %vm3781_vm10, %v2386_v15, %v2390_v16  ;;  %v3495_v38 = vld [vmem:[#allocation2 + $0x30] sm:$0xff]  ;;  %v2091_v12 = vrot.slane %v4354_v4, 5  ;;  %v3211_v50 = vrot.slane %v2061_v26, 9 }
 0x226   : > { %1814 = vmatmul.bf16.gmra.mxu1 %v3467_v35  ;;  %v2644_v35 = vunpack.c.l.b16 %v2604_v18  ;;  %v2482_v59 = vunpack.c.l.b16 %v2391_v25  ;;  %v2609_v55 = vrot.slane %v2607_v47, 4  ;;  %v2608_v62 = vsel %vm3752_vm7, %v3374_v36, %v2607_v47  ;;  %v2584_v15 = vld [vmem:[#allocation2 + $0x30] sm:$0xe] }
 0x227   : > { %v4480_v3 = vpack.c.b16 %v2123_v58, %v2122_v1  ;;  %v2400_v1 = vrot.slane %v2399_v51, 4  ;;  %v2362_v58 = vld [vmem:[#allocation2 + $0x30] sm:$0xf]  ;;  %v2645_v57 = vunpack.c.l.b16 %v2608_v62  ;;  %v2436_v18 = vshll.u32 %v2364_v9, 16 }
 0x228   : > { %v2651_v49 = vpack.c.b16 %v2644_v35, %v2643_v37  ;;  %v2611_v2 = vsel %vm3752_vm7, %v2609_v55, %v2610_v46  ;;  %v2417_v5 = vshrl.u32 %v2362_v58, 16  ;;  %v2093_v20 = vrot.slane %v2091_v12, 4 }
 0x229   : > { %v2405_v27 = vsel %vm3781_vm10, %v2400_v1, %v2404_v33  ;;  %v2616_v25 = vrot.slane %v2614_v13, 4  ;;  %v2617_v37 = vrot.slane %v2364_v9, 5  ;;  %v2438_v53 = vrot.slane %v2436_v18, 5  ;;  %v2365_v33 = vld [vmem:[#allocation2 + $0x3c] sm:$0xf] }
 0x22a   : > { %v2483_v7 = vunpack.c.l.b16 %v2405_v27  ;;  %v2419_v42 = vrot.slane %v2417_v5, 4  ;;  %v2092_v41 = vsel %vm3752_vm7, %v3211_v50, %v2091_v12  ;;  %v2441_v47 = vshrl.u32 %v2365_v33, 16 }
 0x22b   : > { %2332 = vmatmul.bf16.gmra.mxu0 %v3494_v40  ;;  %v2432_v40 = vrot.slane %v2430_v63, 4  ;;  %v2618_v30 = vsel %vm3752_vm7, %v2616_v25, %v2617_v37  ;;  %v2450_v43 = vshll.u32 %v2366_v29, 16  ;;  %v2454_v51 = vshrl.u32 %v2366_v29, 16 }
 0x22c   : > { %v2124_v52 = vunpack.c.l.b16 %v2092_v41  ;;  %v2443_v46 = vrot.slane %v2441_v47, 4  ;;  %v2621_v5 = vrot.slane %v2366_v29, 5 }
 0x22d   : > { %v2433_v17 = vor.u32 %v2432_v40, %v2428_v28  ;;  %v2624_v40 = vrot.slane %v2367_v24, 5 }
 0x22f   : > { %v2434_v4 = vrot.slane %v2433_v17, 4 }
 0x231   : > { %v2439_v45 = vsel %vm3781_vm10, %v2434_v4, %v2438_v53 }
 0x232   : > { %v2486_v55 = vunpack.c.l.b16 %v2439_v45 }
 0x234   : > { %1684 = vmatmul.bf16.gmra.mxu3 %v4399_v39  ;;  %v2381_v39 = vsel %vm3781_vm10, %v2376_v31, %v2380_v61  ;;  %v2420_v61 = vshll.u32 %v2362_v58, 16 }
 0x235   : > { %2045 = vmatmul.bf16.gmra.mxu2 %v1969_v0  ;;  %v2481_v44 = vunpack.c.l.b16 %v2381_v39  ;;  %v2646_v0 = vunpack.c.l.b16 %v2611_v2  ;;  %v3375_v39 = vrot.slane %v2584_v15, 9  ;;  %v2098_v2 = vrot.slane %v4428_v48, 5 }
 0x236   : > { %1819 = vmatmul.bf16.gmra.mxu1 %v3468_v10  ;;  %v2422_v8 = vrot.slane %v2420_v61, 5 }
 0x237   : > { %v2489_v54 = vpack.c.b16 %v2482_v59, %v2481_v44  ;;  %v2652_v11 = vpack.c.b16 %v2646_v0, %v2645_v57  ;;  %v2615_v44 = vsel %vm3752_vm7, %v3375_v39, %v2614_v13  ;;  %v2460_v0 = vshll.u32 %v2367_v24, 16 }
 0x238   : > { %v2423_v16 = vor.u32 %v2422_v8, %v2419_v42  ;;  %v2101_v42 = vrot.slane %v4461_v21, 5  ;;  %v3376_v8 = vrot.slane %v2585_v6, 9 }
 0x23a   : > { %v2424_v35 = vrot.slane %v2423_v16, 4  ;;  %v2622_v16 = vsel %vm3752_vm7, %v3376_v8, %v2621_v5 }
 0x23b   : > { %2337 = vmatmul.bf16.gmra.mxu0 %v3495_v38  ;;  %v2648_v38 = vunpack.c.l.b16 %v2618_v30 }
 0x23c   : > { %v2429_v59 = vsel %vm3781_vm10, %v2424_v35, %v2428_v28  ;;  %v2623_v28 = vrot.slane %v2621_v5, 4 }
 0x23d   : > { %v2485_v36 = vunpack.c.l.b16 %v2429_v59 }
 0x23e   : > { %v2625_v21 = vsel %vm3752_vm7, %v2623_v28, %v2624_v40 }
 0x23f   : > { %v2491_v27 = vpack.c.b16 %v2486_v55, %v2485_v36  ;;  %v2650_v39 = vunpack.c.l.b16 %v2625_v21 }
 0x244   : > { %2192 = vmatmul.bf16.vlgmr.msra.gmra.mxu3 %v4466_v23  ;;  %v2415_v23 = vsel %vm3781_vm10, %v2410_v56, %v2414_v34  ;;  %v2452_v56 = vrot.slane %v2450_v43, 5  ;;  %v2456_v34 = vrot.slane %v2454_v51, 4 }
 0x245   : > { %2715 = vmatmul.bf16.vlgmr.msra.gmra.mxu2 %v2651_v49  ;;  %v2484_v10 = vunpack.c.l.b16 %v2415_v23  ;;  %v2444_v49 = vshll.u32 %v2365_v33, 16  ;;  %v2062_v23 = vld [vmem:[#allocation2 + $0x30] sm:$0xe] }
 0x246   : > { %2553 = vmatmul.bf16.vlgmr.msra.gmra.mxu1 %v2489_v54  ;;  %v2647_v54 = vunpack.c.l.b16 %v2615_v44  ;;  %v2457_v57 = vor.u32 %v2456_v34, %v2452_v56 }
 0x247   : > { %v2490_v31 = vpack.c.b16 %v2484_v10, %v2483_v7  ;;  %v2446_v1 = vrot.slane %v2444_v49, 5  ;;  %v3212_v7 = vrot.slane %v2062_v23, 9  ;;  %v2100_v10 = vrot.slane %v2098_v2, 4 }
 0x248   : > { %v2653_v62 = vpack.c.b16 %v2648_v38, %v2647_v54  ;;  %v2458_v9 = vrot.slane %v2457_v57, 4 }
 0x249   : > { %v2447_v63 = vor.u32 %v2446_v1, %v2443_v46  ;;  %v2102_v15 = vsel %vm3752_vm7, %v2100_v10, %v2101_v42 }
 0x24b   : > { %2342 = vmatmul.bf16.gmra.mxu0 %v3496_v19  ;;  %v2448_v48 = vrot.slane %v2447_v63, 4 }
 0x24d   : > { %v2453_v18 = vsel %vm3781_vm10, %v2448_v48, %v2452_v56 }
 0x24e   : > { %v2487_v25 = vunpack.c.l.b16 %v2453_v18 }
 0x254   : > { %2197 = vmatmul.bf16.gmra.mxu3 %v4480_v3  ;;  %v2095_v3 = vsel %vm3752_vm7, %v2093_v20, %v2094_v22  ;;  %v2127_v20 = vunpack.c.l.b16 %v2102_v15  ;;  %v2649_v22 = vunpack.c.l.b16 %v2622_v16 }
 0x255   : > { %2720 = vmatmul.bf16.gmra.mxu2 %v2652_v11  ;;  %v2125_v14 = vunpack.c.l.b16 %v2095_v3  ;;  %v2462_v11 = vrot.slane %v2460_v0, 5 }
 0x256   : > { %2558 = vmatmul.bf16.gmra.mxu1 %v2490_v31  ;;  %v2099_v31 = vsel %vm3752_vm7, %v3212_v7, %v2098_v2  ;;  %v2654_v32 = vpack.c.b16 %v2650_v39, %v2649_v22 }
 0x257   : > { %v2130_v58 = vpack.c.b16 %v2125_v14, %v2124_v52  ;;  %v2463_v19 = vsel %vm3781_vm10, %v2458_v9, %v2462_v11  ;;  %v2126_v50 = vunpack.c.l.b16 %v2099_v31 }
 0x258   : > { %v2488_v37 = vunpack.c.l.b16 %v2463_v19 }
 0x259   : > { %v2131_v29 = vpack.c.b16 %v2127_v20, %v2126_v50 }
 0x25a   : > { %v2492_v33 = vpack.c.b16 %v2488_v37, %v2487_v25 }
 0x261   : > { %v4516_v61 = vpop.f32.mrf.mxu1 }
 0x263   : > { %v1520_v36 = vpop.f32.mrf.mxu0 }
 0x264   : > { %2202 = vmatmul.bf16.gmra.mxu3 %v2130_v58  ;;  %v1521_v8 = vadd.f32 %v1520_v36, %v4516_v61  ;;  %v4573_v61 = vld [vmem:[%s4641_s3 + $0x2] ss:$0 sm:$0xff] }
 0x265   : > { %2725 = vmatmul.bf16.gmra.mxu2 %v2653_v62 }
 0x266   : > { %2563 = vmatmul.bf16.gmra.mxu1 %v2491_v27 }
 0x267   : > { %v1429_v26 = vpop.f32.mrf.mxu3 }
 0x268   : > { %v1530_v12 = vpop.f32.mrf.mxu2 }
 0x269   : > { %v4519_v13 = vadd.f32 %v1530_v12, %v1429_v26  ;;  %v1421_v17 = vpop.f32.mrf.mxu1 }
 0x26b   : > { %v1522_v56 = vpop.f32.mrf.mxu0 }
 0x26c   : > { %v1523_v26 = vadd.f32 %v1522_v56, %v1421_v17  ;;  %v4578_v17 = vld [vmem:[%s4641_s3 + $0x3] ss:$0 sm:$0xff] }
 0x26f   : > { %v1431_v35 = vpop.f32.mrf.mxu3 }
 0x270   : > { %v1532_v4 = vpop.f32.mrf.mxu2 }
 0x271   : > { %v4533_v53 = vadd.f32 %v1532_v4, %v1431_v35  ;;  %v1424_v41 = vpop.f32.mrf.mxu1 }
 0x273   : > { %v1525_v27 = vpop.f32.mrf.mxu0 }
 0x274   : > { %2207 = vmatmul.bf16.gmra.mxu3 %v2131_v29  ;;  %v1526_v22 = vadd.f32 %v1525_v27, %v1424_v41 }
 0x275   : > { %2730 = vmatmul.bf16.gmra.mxu2 %v2654_v32 }
 0x276   : > { %2568 = vmatmul.bf16.gmra.mxu1 %v2492_v33 }
 0x277   : > { %v1434_v3 = vpop.f32.mrf.mxu3 }
 0x278   : > { %v1535_v60 = vpop.f32.mrf.mxu2 }
 0x279   : > { %v4535_v44 = vadd.f32 %v1535_v60, %v1434_v3  ;;  %v4537_v30 = vpop.f32.mrf.mxu1 }
 0x27b   : > { %v1527_v63 = vpop.f32.mrf.mxu0 }
 0x27f   : > { %v1436_v59 = vpop.f32.mrf.mxu3 }
 0x280   : > { %v1537_v45 = vpop.f32.mrf.mxu2 }
 0x281   : > { %v4539_v47 = vadd.f32 %v1537_v45, %v1436_v59 }
 0x283   : > { %v1805_v49 = vpop.f32.mrf.mxu1 }
 0x287   : > { %v1670_v43 = vpop.f32.mrf.mxu3 }
 0x288   : > { %v2031_v51 = vpop.f32.mrf.mxu2  ;;  %v1690_v28 = vadd.f32 %v1670_v43, %v1521_v8 }
 0x28a   : > { %v1825_v9 = vadd.f32 %v1805_v49, %v1690_v28  ;;  %v1528_v49 = vadd.f32 %v1527_v63, %v4537_v30 }
 0x28b   : > { %v1807_v52 = vpop.f32.mrf.mxu1 }
 0x28c   : > { %v2051_v31 = vadd.f32 %v2031_v51, %v1825_v9 }
 0x28f   : > { %v1672_v14 = vpop.f32.mrf.mxu3 }
 0x290   : > { %v2033_v54 = vpop.f32.mrf.mxu2  ;;  %v1691_v15 = vadd.f32 %v1672_v14, %v1523_v26 }
 0x292   : > { %v1826_v19 = vadd.f32 %v1807_v52, %v1691_v15 }
 0x293   : > { %v1810_v38 = vpop.f32.mrf.mxu1 }
 0x294   : > { %v2052_v25 = vadd.f32 %v2033_v54, %v1826_v19 }
 0x297   : > { %v1675_v55 = vpop.f32.mrf.mxu3 }
 0x298   : > { %v2036_v46 = vpop.f32.mrf.mxu2  ;;  %v2328_v42 = vpop.f32.mrf.mxu0  ;;  %v1692_v37 = vadd.f32 %v1675_v55, %v1526_v22 }
 0x29a   : > { %v1827_v3 = vadd.f32 %v1810_v38, %v1692_v37 }
 0x29b   : > { %v4541_v1 = vpop.f32.mrf.mxu1 }
 0x29c   : > { %v2053_v52 = vadd.f32 %v2036_v46, %v1827_v3 }
 0x29f   : > { %v1677_v34 = vpop.f32.mrf.mxu3 }
 0x2a0   : > { %v4543_v24 = vpop.f32.mrf.mxu2  ;;  %v2330_v12 = vpop.f32.mrf.mxu0  ;;  %v1693_v14 = vadd.f32 %v1677_v34, %v1528_v49 }
 0x2a2   : > { %v1828_v8 = vadd.f32 %v4541_v1, %v1693_v14 }
 0x2a3   : > { %v4545_v58 = vpop.f32.mrf.mxu1 }
 0x2a4   : > { %v2054_v34 = vadd.f32 %v4543_v24, %v1828_v8 }
 0x2a7   : > { %v4547_v62 = vpop.f32.mrf.mxu3 }
 0x2a8   : > { %v4549_v2 = vpop.f32.mrf.mxu2  ;;  %v2333_v4 = vpop.f32.mrf.mxu0 }
 0x2ab   : > { %v4551_v23 = vpop.f32.mrf.mxu1 }
 0x2af   : > { %v4553_v5 = vpop.f32.mrf.mxu3 }
 0x2b0   : > { %v4555_v6 = vpop.f32.mrf.mxu2 }
 0x2b3   : > { %v4557_v57 = vpop.f32.mrf.mxu1 }
 0x2b7   : > { %v4559_v0 = vpop.f32.mrf.mxu3 }
 0x2b8   : > { %v4561_v7 = vpop.f32.mrf.mxu2 }
 0x2bb   : > { %v4563_v10 = vpop.f32.mrf.mxu1 }
 0x2bf   : > { %v4566_v40 = vpop.f32.mrf.mxu3 }
 0x2c0   : > { %v4568_v48 = vpop.f32.mrf.mxu2 }
 0x2c3   : > { %v2554_v11 = vpop.f32.mrf.mxu1 }
 0x2c7   : > { %v2193_v16 = vpop.f32.mrf.mxu3 }
 0x2c8   : > { %v2716_v21 = vpop.f32.mrf.mxu2  ;;  %v2213_v18 = vadd.f32 %v2193_v16, %v2051_v31 }
 0x2ca   : > { %v2348_v50 = vadd.f32 %v2328_v42, %v2213_v18  ;;  %v2335_v42 = vpop.f32.mrf.mxu0 }
 0x2cb   : > { %v2556_v20 = vpop.f32.mrf.mxu1 }
 0x2cc   : > { %v2574_v39 = vadd.f32 %v2554_v11, %v2348_v50  ;;  %v1694_v11 = vadd.f32 %v4547_v62, %v4519_v13  ;;  %v1695_v62 = vadd.f32 %v4553_v5, %v4533_v53  ;;  %v1696_v5 = vadd.f32 %v4559_v0, %v4535_v44 }
 0x2cd   : > { %v1697_v0 = vadd.f32 %v4566_v40, %v4539_v47 }
 0x2ce   : > { %v2736_v35 = vadd.f32 %v2716_v21, %v2574_v39  ;;  %v1829_v21 = vadd.f32 %v4545_v58, %v1694_v11 }
 0x2cf   : > { %v2195_v29 = vpop.f32.mrf.mxu3 }
 0x2d0   : > { %v2718_v32 = vpop.f32.mrf.mxu2  ;;  %v2746_v33 = vmul.f32 %v4573_v61, %v2736_v35  ;;  %v2214_v41 = vadd.f32 %v2195_v29, %v2052_v25  ;;  %v2055_v13 = vadd.f32 %v4549_v2, %v1829_v21  ;;  %v1830_v29 = vadd.f32 %v4551_v23, %v1695_v62 }
 0x2d2   : > { %v2756_v60 = vadd.f32 %v4578_v17, %v2746_v33  ;;  %v2349_v59 = vadd.f32 %v2330_v12, %v2214_v41  ;;  %v2338_v50 = vpop.f32.mrf.mxu0  ;;  %v2056_v53 = vadd.f32 %v4555_v6, %v1830_v29 }
 0x2d3   : > { %v2559_v45 = vpop.f32.mrf.mxu1 }
 0x2d4   : > { %vm2764_vm7 = vcmp.gt.f32.partialorder %v2756_v60, 0.0  ;;  %v2772_v43 = vmul.f32 0.01, %v2756_v60  ;;  %v2575_v51 = vadd.f32 %v2556_v20, %v2349_v59 }
 0x2d6   : > { %v2780_v54 = vsel %vm2764_vm7, %v2756_v60, %v2772_v43  ;;  %v2737_v36 = vadd.f32 %v2718_v32, %v2575_v51 }
 0x2d7   : > { %2788 = vst [vmem:[%s3709_s8] sm:$0xff] %v2780_v54  ;;  %v2198_v55 = vpop.f32.mrf.mxu3 }
 0x2d8   : > { %v2721_v56 = vpop.f32.mrf.mxu2  ;;  %v2747_v27 = vmul.f32 %v4573_v61, %v2737_v36  ;;  %v2215_v38 = vadd.f32 %v2198_v55, %v2053_v52  ;;  %v1831_v52 = vadd.f32 %v4557_v57, %v1696_v5 }
 0x2da   : > { %v2757_v28 = vadd.f32 %v4578_v17, %v2747_v27  ;;  %v2350_v30 = vadd.f32 %v2333_v4, %v2215_v38  ;;  %v2340_v3 = vpop.f32.mrf.mxu0  ;;  %v2057_v44 = vadd.f32 %v4561_v7, %v1831_v52 }
 0x2db   : > { %v2561_v63 = vpop.f32.mrf.mxu1 }
 0x2dc   : > { %vm2765_vm10 = vcmp.gt.f32.partialorder %v2757_v28, 0.0  ;;  %v2773_v9 = vmul.f32 0.01, %v2757_v28  ;;  %v2576_v46 = vadd.f32 %v2559_v45, %v2350_v30 }
 0x2de   : > { %v2781_v26 = vsel %vm2765_vm10, %v2757_v28, %v2773_v9  ;;  %v2738_v12 = vadd.f32 %v2721_v56, %v2576_v46  ;;  %v1832_v28 = vadd.f32 %v4563_v10, %v1697_v0 }
 0x2df   : > { %2789 = vst [vmem:[%s3709_s8 + $0x8] sm:$0xff] %v2781_v26  ;;  %v2200_v31 = vpop.f32.mrf.mxu3 }
 0x2e0   : > { %v2723_v15 = vpop.f32.mrf.mxu2  ;;  %v2748_v1 = vmul.f32 %v4573_v61, %v2738_v12  ;;  %v2216_v16 = vadd.f32 %v2200_v31, %v2054_v34  ;;  %v2058_v47 = vadd.f32 %v4568_v48, %v1832_v28 }
 0x2e2   : > { %v2758_v18 = vadd.f32 %v4578_v17, %v2748_v1  ;;  %v2351_v19 = vadd.f32 %v2335_v42, %v2216_v16  ;;  %v2343_v27 = vpop.f32.mrf.mxu0 }
 0x2e3   : > { %v2564_v22 = vpop.f32.mrf.mxu1 }
 0x2e4   : > { %vm2766_vm9 = vcmp.gt.f32.partialorder %v2758_v18, 0.0  ;;  %v2774_v24 = vmul.f32 0.01, %v2758_v18  ;;  %v2577_v20 = vadd.f32 %v2561_v63, %v2351_v19 }
 0x2e6   : > { %v2782_v39 = vsel %vm2766_vm9, %v2758_v18, %v2774_v24  ;;  %v2739_v25 = vadd.f32 %v2723_v15, %v2577_v20 }
 0x2e7   : > { %2790 = vst [vmem:[%s3709_s8 + $0x10] sm:$0xff] %v2782_v39  ;;  %v2203_v37 = vpop.f32.mrf.mxu3 }
 0x2e8   : > { %v2726_v35 = vpop.f32.mrf.mxu2  ;;  %v2749_v58 = vmul.f32 %v4573_v61, %v2739_v25  ;;  %v2217_v4 = vadd.f32 %v2203_v37, %v2055_v13 }
 0x2ea   : > { %v2759_v32 = vadd.f32 %v4578_v17, %v2749_v58  ;;  %v2352_v33 = vadd.f32 %v2338_v50, %v2217_v4  ;;  %v2345_v31 = vpop.f32.mrf.mxu0 }
 0x2eb   : > { %v2566_v45 = vpop.f32.mrf.mxu1 }
 0x2ec   : > { %vm2767_vm14 = vcmp.gt.f32.partialorder %v2759_v32, 0.0  ;;  %v2775_v41 = vmul.f32 0.01, %v2759_v32  ;;  %v2578_v2 = vadd.f32 %v2564_v22, %v2352_v33 }
 0x2ee   : > { %v2783_v60 = vsel %vm2767_vm14, %v2759_v32, %v2775_v41  ;;  %v2740_v59 = vadd.f32 %v2726_v35, %v2578_v2 }
 0x2ef   : > { %2791 = vst [vmem:[%s3709_s8 + $0x18] sm:$0xff] %v2783_v60  ;;  %v2205_v49 = vpop.f32.mrf.mxu3 }
 0x2f0   : > { %v2750_v23 = vmul.f32 %v4573_v61, %v2740_v59  ;;  %v2218_v43 = vadd.f32 %v2205_v49, %v2056_v53  ;;  %v2728_v51 = vpop.f32.mrf.mxu2 }
 0x2f2   : > { %v2760_v14 = vadd.f32 %v4578_v17, %v2750_v23  ;;  %v2353_v54 = vadd.f32 %v2340_v3, %v2218_v43 }
 0x2f3   : > { %v2569_v8 = vpop.f32.mrf.mxu1 }
 0x2f4   : > { %vm2768_vm15 = vcmp.gt.f32.partialorder %v2760_v14, 0.0  ;;  %v2776_v6 = vmul.f32 0.01, %v2760_v14  ;;  %v2579_v36 = vadd.f32 %v2566_v45, %v2353_v54 }
 0x2f6   : > { %v2784_v55 = vsel %vm2768_vm15, %v2760_v14, %v2776_v6  ;;  %v2741_v56 = vadd.f32 %v2728_v51, %v2579_v36 }
 0x2f7   : > { %2792 = vst [vmem:[%s3709_s8 + $0x20] sm:$0xff] %v2784_v55  ;;  %v2208_v38 = vpop.f32.mrf.mxu3 }
 0x2f8   : > { %v2751_v42 = vmul.f32 %v4573_v61, %v2741_v56  ;;  %v2219_v57 = vadd.f32 %v2208_v38, %v2057_v44  ;;  %v2731_v9 = vpop.f32.mrf.mxu2 }
 0x2fa   : > { %v2761_v30 = vadd.f32 %v4578_v17, %v2751_v42  ;;  %v2354_v63 = vadd.f32 %v2343_v27, %v2219_v57 }
 0x2fb   : > { %v2571_v1 = vpop.f32.mrf.mxu1 }
 0x2fc   : > { %vm2769_vm0 = vcmp.gt.f32.partialorder %v2761_v30, 0.0  ;;  %v2777_v7 = vmul.f32 0.01, %v2761_v30  ;;  %v2580_v46 = vadd.f32 %v2569_v8, %v2354_v63 }
 0x2fe   : > { %v2785_v40 = vsel %vm2769_vm0, %v2761_v30, %v2777_v7  ;;  %v2742_v34 = vadd.f32 %v2731_v9, %v2580_v46 }
 0x2ff   : > { %2793 = vst [vmem:[%s3709_s8 + $0x28] sm:$0xff] %v2785_v40  ;;  %v2210_v11 = vpop.f32.mrf.mxu3 }
 0x300   : > { %v2752_v26 = vmul.f32 %v4573_v61, %v2742_v34  ;;  %v2220_v12 = vadd.f32 %v2210_v11, %v2058_v47  ;;  %v2733_v18 = vpop.f32.mrf.mxu2 }
 0x302   : > { %v2762_v10 = vadd.f32 %v4578_v17, %v2752_v26  ;;  %v2355_v15 = vadd.f32 %v2345_v31, %v2220_v12 }
 0x304   : > { %vm2770_vm1 = vcmp.gt.f32.partialorder %v2762_v10, 0.0  ;;  %v2778_v16 = vmul.f32 0.01, %v2762_v10  ;;  %v2581_v21 = vadd.f32 %v2571_v1, %v2355_v15 }
 0x306   : > { %v2786_v19 = vsel %vm2770_vm1, %v2762_v10, %v2778_v16  ;;  %v2743_v48 = vadd.f32 %v2733_v18, %v2581_v21 }
 0x307   : > { %2794 = vst [vmem:[%s3709_s8 + $0x30] sm:$0xff] %v2786_v19 }
 0x308   : > { %v2753_v50 = vmul.f32 %v4573_v61, %v2743_v48 }
 0x30a   : > { %v2763_v24 = vadd.f32 %v4578_v17, %v2753_v50 }
 0x30c   : > { %vm2771_vm2 = vcmp.gt.f32.partialorder %v2763_v24, 0.0  ;;  %v2779_v20 = vmul.f32 0.01, %v2763_v24 }
 0x30e   : > { %v2787_v22 = vsel %vm2771_vm2, %v2763_v24, %v2779_v20 }
 0x30f   : > { %2795 = vst [vmem:[%s3709_s8 + $0x38] sm:$0xff] %v2787_v22 }
 0x310 PF: > { %s14_s19 = sadd.s32 1, %s3630_s19   ;;  %s4657_s15 = smov %s3622_s17 }
 0x311   : > { %p11_p10 = scmp.ge.s32.totalorder %s14_s19, 10   ;;  %s4658_s16 = smov %s3626_s18 }
 0x312   : > { %s4659_s17 = smov %s4662_s20  ;;  %s4660_s18 = smov %s4666_s21 }
 0x313   :  { %13 = sbr.rel (!%p11_p10) target bundleno = 3 (0x3), region = 89 }

</bundles_post_ra>
